<compile_context>
chip_gen: v7x
topology: tpu7x:2x2x1
jax: 0.10.0
libtpu: 0.0.40
codegen_flags: <defaults>
</compile_context>

<pallas_src>
import math

import jax
import jax.numpy as jnp
from jax import lax
from jax.experimental import pallas as pl
from jax.experimental.pallas import tpu as pltpu

_EPS = 1e-5
_PADF = 128   # zero frame on each side of the flat spatial axis (>= W+1; 128 keeps stores aligned)


def _make_dense_block_kernel(nb_layers, in_planes, growth, H, W):
    S = H * W
    c_final = in_planes + nb_layers * growth

    def kernel(*refs):
        x_ref = refs[0]
        layer_refs = refs[1:1 + 3 * nb_layers]
        out_ref = refs[1 + 3 * nb_layers]
        act_ref = refs[2 + 3 * nb_layers]           # (c_final, 2*PADF + S) f32 VMEM scratch
        s_ext = act_ref.shape[1]

        # Zero the scratch once per image (cheap, ~64KB) so the frame / not-yet-written
        # channels never hold garbage (NaN-safety before the per-layer masking).
        act_ref[...] = jnp.zeros_like(act_ref)

        # Drop the input image (channel-major, flat spatial) into the frame.
        act_ref[0:in_planes, _PADF:_PADF + S] = x_ref[0]

        # Lane masks over the extended flat-spatial axis (computed once, reused per layer).
        lane = lax.broadcasted_iota(jnp.int32, (1, s_ext), 1)
        q = lane - _PADF
        col = q % W
        valid = (q >= 0) & (q < S)                  # inside the image
        keep_kw0 = valid & (col != W - 1)           # source mask for kw=0 taps (left neighbour)
        keep_kw2 = valid & (col != 0)               # source mask for kw=2 taps (right neighbour)

        for i in range(nb_layers):                  # static unroll (shapes differ per layer)
            cin = in_planes + i * growth
            s_ref = layer_refs[3 * i + 0]           # (cin, 1)  folded BN scale
            b_ref = layer_refs[3 * i + 1]           # (cin, 1)  folded BN bias
            w_ref = layer_refs[3 * i + 2]           # (growth, 9*cin) im2col conv weights

            a = act_ref[0:cin, :]                                   # (cin, s_ext)
            z = jnp.maximum(a * s_ref[...] + b_ref[...], 0.0)       # fused BN + ReLU (VPU)
            # The conv's zero padding must see exact zeros (not relu(bias)); the column-masked
            # copies also neutralise row wrap-around of the +-1 flat lane shifts.
            y_c = jnp.where(valid, z, 0.0)          # source for kw=1 taps
            y_l = jnp.where(keep_kw0, z, 0.0)       # source for kw=0 taps
            y_r = jnp.where(keep_kw2, z, 0.0)       # source for kw=2 taps

            # im2col: 9 statically lane-shifted patches stacked along the sublane axis,
            # tap-major to match the wrapper's (O, kh, kw, I) weight reshape.
            pieces = []
            for kh in range(3):
                for kw in range(3):
                    src = (y_l, y_c, y_r)[kw]
                    d = (kh - 1) * W + (kw - 1)
                    pieces.append(src[:, _PADF + d:_PADF + d + S])  # (cin, S)
            patches = jnp.concatenate(pieces, axis=0)               # (9*cin, S)

            out = jnp.dot(w_ref[...], patches,
                          preferred_element_type=jnp.float32)       # (growth, S) on the MXU

            # Dense connectivity: append the new channels in place (this is the "concat").
            act_ref[cin:cin + growth, _PADF:_PADF + S] = out

        out_ref[0] = act_ref[0:c_final, _PADF:_PADF + S].astype(out_ref.dtype)

    return kernel


def dense_block_forward(x_nchw, params, drop_rate=0.0):
    """DenseBlock.forward: NCHW in, NCHW out (matches the torch module)."""
    # TODO(synk): dropout not implemented (dropRate=0.0 / eval mode -> no-op).
    N, C0, H, W = x_nchw.shape
    L = len(params)
    growth = params[0]["w"].shape[0]
    c_final = C0 + L * growth
    S = H * W
    s_ext = 2 * _PADF + S
    assert W + 1 <= _PADF, "flat zero frame must cover the +-(W+1) conv tap shifts"

    args = [x_nchw.reshape(N, C0, S)]               # flatten HW (contiguous -> free)
    in_specs = [pl.BlockSpec((1, C0, S), lambda n: (n, 0, 0))]
    for p in params:
        cout, cin = p["w"].shape[0], p["w"].shape[1]
        scale = p["gamma"] / jnp.sqrt(p["var"] + _EPS)
        bias = p["beta"] - p["mean"] * scale
        # OIHW -> (O, kh, kw, I) -> (O, 9*I); tap index t = kh*3 + kw matches the kernel.
        w_im2col = jnp.transpose(p["w"], (0, 2, 3, 1)).reshape(cout, 9 * cin)
        args += [scale.reshape(cin, 1), bias.reshape(cin, 1), w_im2col]
        in_specs += [
            pl.BlockSpec((cin, 1), lambda n: (0, 0)),
            pl.BlockSpec((cin, 1), lambda n: (0, 0)),
            pl.BlockSpec((cout, 9 * cin), lambda n: (0, 0)),
        ]

    out_flat = pl.pallas_call(
        _make_dense_block_kernel(L, C0, growth, H, W),
        out_shape=jax.ShapeDtypeStruct((N, c_final, S), x_nchw.dtype),
        grid_spec=pltpu.PrefetchScalarGridSpec(
            num_scalar_prefetch=0,
            grid=(N,),                              # batch axis, sharded across TCs on v7x
            in_specs=in_specs,
            out_specs=pl.BlockSpec((1, c_final, S), lambda n: (n, 0, 0)),
            scratch_shapes=[pltpu.VMEM((c_final, s_ext), jnp.float32)],
        ),
        compiler_params=pltpu.CompilerParams(dimension_semantics=("parallel",)),
    )(*args)
    return out_flat.reshape(N, c_final, H, W)


def init_dense_block_params(key, nb_layers, in_planes, growth_rate):
    """Deterministic synthetic parameters matching the torch module's shapes."""
    params = []
    for i in range(nb_layers):
        cin = in_planes + i * growth_rate
        key, k1, k2, k3, k4, k5 = jax.random.split(key, 6)
        gamma = 1.0 + 0.1 * jax.random.normal(k1, (cin,), jnp.float32)
        beta = 0.1 * jax.random.normal(k2, (cin,), jnp.float32)
        mean = 0.1 * jax.random.normal(k3, (cin,), jnp.float32)
        var = 1.0 + 0.1 * jax.random.uniform(k4, (cin,), jnp.float32)
        # torch conv weight layout: (Cout, Cin, 3, 3); kaiming-style std.
        w = jax.random.normal(k5, (growth_rate, cin, 3, 3), jnp.float32) * math.sqrt(
            2.0 / (cin * 9))
        params.append(dict(gamma=gamma, beta=beta, mean=mean, var=var, w=w))
    return params


def dense_block_ref(x_nchw, params):
    """Pure-JAX reference (eval-mode BN + 3x3 conv), NCHW throughout."""
    x = x_nchw
    for p in params:
        scale = (p["gamma"] / jnp.sqrt(p["var"] + _EPS)).reshape(1, -1, 1, 1)
        bias = (p["beta"] - p["mean"] * p["gamma"] / jnp.sqrt(p["var"] + _EPS)).reshape(
            1, -1, 1, 1)
        y = jnp.maximum(x * scale + bias, 0.0)
        out = lax.conv_general_dilated(
            y, p["w"], window_strides=(1, 1), padding=((1, 1), (1, 1)),
            dimension_numbers=("NCHW", "OIHW", "NCHW"))
        x = jnp.concatenate([x, out], axis=1)
    return x


if __name__ == "__main__":
    # DenseBlock(nb_layers=3, in_planes=8, growth_rate=8) on x of shape (N=2, C=8, H=16, W=16).
    nb_layers, in_planes, growth_rate = 3, 8, 8
    N, H, W = 2, 16, 16

    key = jax.random.PRNGKey(0)
    key, kx = jax.random.split(key)
    x = jax.random.normal(kx, (N, in_planes, H, W), jnp.float32)
    params = init_dense_block_params(key, nb_layers, in_planes, growth_rate)

    out = jax.block_until_ready(jax.jit(dense_block_forward)(x, params))

    expected_c = in_planes + nb_layers * growth_rate
    assert out.shape == (N, expected_c, H, W), out.shape

    ref = jax.block_until_ready(dense_block_ref(x, params))
    # Both kernel and reference use default (bf16-pass) MXU precision -> ~1e-3..1e-2 level diffs.
    if not jnp.allclose(out, ref, rtol=2e-2, atol=2e-2):
        max_err = float(jnp.max(jnp.abs(out - ref)))
        raise AssertionError(f"Pallas DenseBlock mismatch, max abs err = {max_err}")

    print("KERNEL_OK")
</pallas_src>

<mosaic_0001>
module attributes {stable_mosaic.version = 11 : i64} {
  func.func @kernel(%arg0: i32, %arg1: memref<1x8x256xf32, #tpu.memory_space<vmem>>, %arg2: memref<8x1xf32, #tpu.memory_space<vmem>>, %arg3: memref<8x1xf32, #tpu.memory_space<vmem>>, %arg4: memref<8x72xf32, #tpu.memory_space<vmem>>, %arg5: memref<16x1xf32, #tpu.memory_space<vmem>>, %arg6: memref<16x1xf32, #tpu.memory_space<vmem>>, %arg7: memref<8x144xf32, #tpu.memory_space<vmem>>, %arg8: memref<24x1xf32, #tpu.memory_space<vmem>>, %arg9: memref<24x1xf32, #tpu.memory_space<vmem>>, %arg10: memref<8x216xf32, #tpu.memory_space<vmem>>, %arg11: memref<1x32x256xf32, #tpu.memory_space<vmem>>, %arg12: memref<32x512xf32, #tpu.memory_space<vmem>>) attributes {dimension_semantics = [#tpu.dimension_semantics<parallel>], iteration_bounds = array<i64: 2>, scalar_prefetch = 0 : i64, scratch_operands = 1 : i64, tpu.core_type = #tpu.core_type<tc>, window_params = [{transform_indices = @transform_0, window_bounds = array<i64: 1, 8, 256>}, {pipeline_mode = #tpu.pipeline_mode<synchronous>, transform_indices = @transform_1, window_bounds = array<i64: 8, 1>}, {pipeline_mode = #tpu.pipeline_mode<synchronous>, transform_indices = @transform_2, window_bounds = array<i64: 8, 1>}, {pipeline_mode = #tpu.pipeline_mode<synchronous>, transform_indices = @transform_3, window_bounds = array<i64: 8, 72>}, {pipeline_mode = #tpu.pipeline_mode<synchronous>, transform_indices = @transform_4, window_bounds = array<i64: 16, 1>}, {pipeline_mode = #tpu.pipeline_mode<synchronous>, transform_indices = @transform_5, window_bounds = array<i64: 16, 1>}, {pipeline_mode = #tpu.pipeline_mode<synchronous>, transform_indices = @transform_6, window_bounds = array<i64: 8, 144>}, {pipeline_mode = #tpu.pipeline_mode<synchronous>, transform_indices = @transform_7, window_bounds = array<i64: 24, 1>}, {pipeline_mode = #tpu.pipeline_mode<synchronous>, transform_indices = @transform_8, window_bounds = array<i64: 24, 1>}, {pipeline_mode = #tpu.pipeline_mode<synchronous>, transform_indices = @transform_9, window_bounds = array<i64: 8, 216>}, {transform_indices = @transform_10, window_bounds = array<i64: 1, 32, 256>}]} {
    %cst = arith.constant 0.000000e+00 : f32
    %0 = vector.broadcast %cst : f32 to vector<32x512xf32>
    %c0 = arith.constant 0 : index
    %c0_0 = arith.constant 0 : index
    %1 = vector.load %arg12[%c0, %c0_0] : memref<32x512xf32, #tpu.memory_space<vmem>>, vector<32x512xf32>
    tpu.vector_store %arg12[%c0, %c0_0], %0 {strides = array<i32>} : memref<32x512xf32, #tpu.memory_space<vmem>>, vector<32x512xf32>,
    %c0_1 = arith.constant 0 : index
    %c0_2 = arith.constant 0 : index
    %c0_3 = arith.constant 0 : index
    %2 = vector.load %arg1[%c0_1, %c0_2, %c0_3] : memref<1x8x256xf32, #tpu.memory_space<vmem>>, vector<1x8x256xf32>
    %3 = vector.shape_cast %2 : vector<1x8x256xf32> to vector<8x256xf32>
    %c0_4 = arith.constant 0 : index
    %c128 = arith.constant 128 : index
    %4 = vector.load %arg12[%c0_4, %c128] : memref<32x512xf32, #tpu.memory_space<vmem>>, vector<8x256xf32>
    tpu.vector_store %arg12[%c0_4, %c128], %3 {strides = array<i32>} : memref<32x512xf32, #tpu.memory_space<vmem>>, vector<8x256xf32>,
    %5 = tpu.iota {dimensions = array<i32: 1>} : vector<1x512xi32>
    %c128_i32 = arith.constant 128 : i32
    %6 = vector.broadcast %c128_i32 : i32 to vector<1x512xi32>
    %7 = arith.subi %5, %6 : vector<1x512xi32>
    %c16_i32 = arith.constant 16 : i32
    %c0_i32 = arith.constant 0 : i32
    %8 = arith.cmpi eq, %c16_i32, %c0_i32 : i32
    %c1_i32 = arith.constant 1 : i32
    %9 = arith.select %8, %c1_i32, %c16_i32 : i32
    %10 = vector.broadcast %9 : i32 to vector<1x512xi32>
    %11 = arith.remsi %7, %10 : vector<1x512xi32>
    %c0_i32_5 = arith.constant 0 : i32
    %12 = vector.broadcast %c0_i32_5 : i32 to vector<1x512xi32>
    %13 = arith.cmpi ne, %11, %12 : vector<1x512xi32>
    %c0_i32_6 = arith.constant 0 : i32
    %14 = vector.broadcast %c0_i32_6 : i32 to vector<1x512xi32>
    %15 = arith.cmpi slt, %11, %14 : vector<1x512xi32>
    %c0_i32_7 = arith.constant 0 : i32
    %16 = arith.cmpi slt, %9, %c0_i32_7 : i32
    %17 = vector.broadcast %16 : i1 to vector<1x512xi1>
    %18 = vector.broadcast %17 : vector<1x512xi1> to vector<1x512xi1>
    %19 = arith.xori %15, %18 : vector<1x512xi1>
    %20 = arith.andi %19, %13 : vector<1x512xi1>
    %21 = vector.broadcast %9 : i32 to vector<1x512xi32>
    %22 = arith.addi %11, %21 : vector<1x512xi32>
    %23 = arith.select %20, %22, %11 : vector<1x512xi1>, vector<1x512xi32>
    %c0_i32_8 = arith.constant 0 : i32
    %24 = vector.broadcast %c0_i32_8 : i32 to vector<1x512xi32>
    %25 = arith.cmpi sge, %7, %24 : vector<1x512xi32>
    %c256_i32 = arith.constant 256 : i32
    %26 = vector.broadcast %c256_i32 : i32 to vector<1x512xi32>
    %27 = arith.cmpi slt, %7, %26 : vector<1x512xi32>
    %28 = arith.andi %25, %27 : vector<1x512xi1>
    %c15_i32 = arith.constant 15 : i32
    %29 = vector.broadcast %c15_i32 : i32 to vector<1x512xi32>
    %30 = arith.cmpi ne, %23, %29 : vector<1x512xi32>
    %31 = arith.andi %28, %30 : vector<1x512xi1>
    %c0_i32_9 = arith.constant 0 : i32
    %32 = vector.broadcast %c0_i32_9 : i32 to vector<1x512xi32>
    %33 = arith.cmpi ne, %23, %32 : vector<1x512xi32>
    %34 = arith.andi %28, %33 : vector<1x512xi1>
    %c0_10 = arith.constant 0 : index
    %c0_11 = arith.constant 0 : index
    %35 = vector.load %arg12[%c0_10, %c0_11] : memref<32x512xf32, #tpu.memory_space<vmem>>, vector<8x512xf32>
    %c0_12 = arith.constant 0 : index
    %c0_13 = arith.constant 0 : index
    %36 = vector.load %arg2[%c0_12, %c0_13] : memref<8x1xf32, #tpu.memory_space<vmem>>, vector<8x1xf32>
    %37 = vector.broadcast %36 : vector<8x1xf32> to vector<8x512xf32>
    %38 = arith.mulf %35, %37 : vector<8x512xf32>
    %c0_14 = arith.constant 0 : index
    %c0_15 = arith.constant 0 : index
    %39 = vector.load %arg3[%c0_14, %c0_15] : memref<8x1xf32, #tpu.memory_space<vmem>>, vector<8x1xf32>
    %40 = vector.broadcast %39 : vector<8x1xf32> to vector<8x512xf32>
    %41 = arith.addf %38, %40 : vector<8x512xf32>
    %cst_16 = arith.constant 0.000000e+00 : f32
    %42 = vector.broadcast %cst_16 : f32 to vector<8x512xf32>
    %43 = arith.maximumf %41, %42 : vector<8x512xf32>
    %cst_17 = arith.constant 0.000000e+00 : f32
    %44 = vector.shape_cast %28 : vector<1x512xi1> to vector<1x512xi1>
    %45 = vector.broadcast %44 : vector<1x512xi1> to vector<8x512xi1>
    %46 = vector.broadcast %cst_17 : f32 to vector<8x512xf32>
    %47 = arith.select %45, %43, %46 : vector<8x512xi1>, vector<8x512xf32>
    %cst_18 = arith.constant 0.000000e+00 : f32
    %48 = vector.shape_cast %31 : vector<1x512xi1> to vector<1x512xi1>
    %49 = vector.broadcast %48 : vector<1x512xi1> to vector<8x512xi1>
    %50 = vector.broadcast %cst_18 : f32 to vector<8x512xf32>
    %51 = arith.select %49, %43, %50 : vector<8x512xi1>, vector<8x512xf32>
    %cst_19 = arith.constant 0.000000e+00 : f32
    %52 = vector.shape_cast %34 : vector<1x512xi1> to vector<1x512xi1>
    %53 = vector.broadcast %52 : vector<1x512xi1> to vector<8x512xi1>
    %54 = vector.broadcast %cst_19 : f32 to vector<8x512xf32>
    %55 = arith.select %53, %43, %54 : vector<8x512xi1>, vector<8x512xf32>
    %56 = vector.extract_strided_slice %51 {offsets = [0, 111], sizes = [8, 256], strides = [1, 1]} : vector<8x512xf32> to vector<8x256xf32>
    %57 = vector.extract_strided_slice %47 {offsets = [0, 112], sizes = [8, 256], strides = [1, 1]} : vector<8x512xf32> to vector<8x256xf32>
    %58 = vector.extract_strided_slice %55 {offsets = [0, 113], sizes = [8, 256], strides = [1, 1]} : vector<8x512xf32> to vector<8x256xf32>
    %59 = vector.extract_strided_slice %51 {offsets = [0, 127], sizes = [8, 256], strides = [1, 1]} : vector<8x512xf32> to vector<8x256xf32>
    %60 = vector.extract_strided_slice %47 {offsets = [0, 128], sizes = [8, 256], strides = [1, 1]} : vector<8x512xf32> to vector<8x256xf32>
    %61 = vector.extract_strided_slice %55 {offsets = [0, 129], sizes = [8, 256], strides = [1, 1]} : vector<8x512xf32> to vector<8x256xf32>
    %62 = vector.extract_strided_slice %51 {offsets = [0, 143], sizes = [8, 256], strides = [1, 1]} : vector<8x512xf32> to vector<8x256xf32>
    %63 = vector.extract_strided_slice %47 {offsets = [0, 144], sizes = [8, 256], strides = [1, 1]} : vector<8x512xf32> to vector<8x256xf32>
    %64 = vector.extract_strided_slice %55 {offsets = [0, 145], sizes = [8, 256], strides = [1, 1]} : vector<8x512xf32> to vector<8x256xf32>
    %65 = tpu.concatenate %56, %57, %58, %59, %60, %61, %62, %63, %64 in 0 : vector<8x256xf32>, vector<8x256xf32>, vector<8x256xf32>, vector<8x256xf32>, vector<8x256xf32>, vector<8x256xf32>, vector<8x256xf32>, vector<8x256xf32>, vector<8x256xf32> -> vector<72x256xf32>
    %c0_20 = arith.constant 0 : index
    %c0_21 = arith.constant 0 : index
    %66 = vector.load %arg4[%c0_20, %c0_21] : memref<8x72xf32, #tpu.memory_space<vmem>>, vector<8x72xf32>
    %cst_22 = arith.constant dense<0.000000e+00> : vector<8x256xf32>
    %67 = tpu.matmul %66, %65, %cst_22 {dimension_numbers = #tpu.dot_dimension_numbers<[1], [0], [0], [1], [0, 0, 1, 1], [], []>} : vector<8x72xf32>, vector<72x256xf32>, vector<8x256xf32> -> vector<8x256xf32>
    %c8 = arith.constant 8 : index
    %c128_23 = arith.constant 128 : index
    %68 = vector.load %arg12[%c8, %c128_23] : memref<32x512xf32, #tpu.memory_space<vmem>>, vector<8x256xf32>
    tpu.vector_store %arg12[%c8, %c128_23], %67 {strides = array<i32>} : memref<32x512xf32, #tpu.memory_space<vmem>>, vector<8x256xf32>,
    %c0_24 = arith.constant 0 : index
    %c0_25 = arith.constant 0 : index
    %69 = vector.load %arg12[%c0_24, %c0_25] : memref<32x512xf32, #tpu.memory_space<vmem>>, vector<16x512xf32>
    %c0_26 = arith.constant 0 : index
    %c0_27 = arith.constant 0 : index
    %70 = vector.load %arg5[%c0_26, %c0_27] : memref<16x1xf32, #tpu.memory_space<vmem>>, vector<16x1xf32>
    %71 = vector.broadcast %70 : vector<16x1xf32> to vector<16x512xf32>
    %72 = arith.mulf %69, %71 : vector<16x512xf32>
    %c0_28 = arith.constant 0 : index
    %c0_29 = arith.constant 0 : index
    %73 = vector.load %arg6[%c0_28, %c0_29] : memref<16x1xf32, #tpu.memory_space<vmem>>, vector<16x1xf32>
    %74 = vector.broadcast %73 : vector<16x1xf32> to vector<16x512xf32>
    %75 = arith.addf %72, %74 : vector<16x512xf32>
    %cst_30 = arith.constant 0.000000e+00 : f32
    %76 = vector.broadcast %cst_30 : f32 to vector<16x512xf32>
    %77 = arith.maximumf %75, %76 : vector<16x512xf32>
    %cst_31 = arith.constant 0.000000e+00 : f32
    %78 = vector.shape_cast %28 : vector<1x512xi1> to vector<1x512xi1>
    %79 = vector.broadcast %78 : vector<1x512xi1> to vector<16x512xi1>
    %80 = vector.broadcast %cst_31 : f32 to vector<16x512xf32>
    %81 = arith.select %79, %77, %80 : vector<16x512xi1>, vector<16x512xf32>
    %cst_32 = arith.constant 0.000000e+00 : f32
    %82 = vector.shape_cast %31 : vector<1x512xi1> to vector<1x512xi1>
    %83 = vector.broadcast %82 : vector<1x512xi1> to vector<16x512xi1>
    %84 = vector.broadcast %cst_32 : f32 to vector<16x512xf32>
    %85 = arith.select %83, %77, %84 : vector<16x512xi1>, vector<16x512xf32>
    %cst_33 = arith.constant 0.000000e+00 : f32
    %86 = vector.shape_cast %34 : vector<1x512xi1> to vector<1x512xi1>
    %87 = vector.broadcast %86 : vector<1x512xi1> to vector<16x512xi1>
    %88 = vector.broadcast %cst_33 : f32 to vector<16x512xf32>
    %89 = arith.select %87, %77, %88 : vector<16x512xi1>, vector<16x512xf32>
    %90 = vector.extract_strided_slice %85 {offsets = [0, 111], sizes = [16, 256], strides = [1, 1]} : vector<16x512xf32> to vector<16x256xf32>
    %91 = vector.extract_strided_slice %81 {offsets = [0, 112], sizes = [16, 256], strides = [1, 1]} : vector<16x512xf32> to vector<16x256xf32>
    %92 = vector.extract_strided_slice %89 {offsets = [0, 113], sizes = [16, 256], strides = [1, 1]} : vector<16x512xf32> to vector<16x256xf32>
    %93 = vector.extract_strided_slice %85 {offsets = [0, 127], sizes = [16, 256], strides = [1, 1]} : vector<16x512xf32> to vector<16x256xf32>
    %94 = vector.extract_strided_slice %81 {offsets = [0, 128], sizes = [16, 256], strides = [1, 1]} : vector<16x512xf32> to vector<16x256xf32>
    %95 = vector.extract_strided_slice %89 {offsets = [0, 129], sizes = [16, 256], strides = [1, 1]} : vector<16x512xf32> to vector<16x256xf32>
    %96 = vector.extract_strided_slice %85 {offsets = [0, 143], sizes = [16, 256], strides = [1, 1]} : vector<16x512xf32> to vector<16x256xf32>
    %97 = vector.extract_strided_slice %81 {offsets = [0, 144], sizes = [16, 256], strides = [1, 1]} : vector<16x512xf32> to vector<16x256xf32>
    %98 = vector.extract_strided_slice %89 {offsets = [0, 145], sizes = [16, 256], strides = [1, 1]} : vector<16x512xf32> to vector<16x256xf32>
    %99 = tpu.concatenate %90, %91, %92, %93, %94, %95, %96, %97, %98 in 0 : vector<16x256xf32>, vector<16x256xf32>, vector<16x256xf32>, vector<16x256xf32>, vector<16x256xf32>, vector<16x256xf32>, vector<16x256xf32>, vector<16x256xf32>, vector<16x256xf32> -> vector<144x256xf32>
    %c0_34 = arith.constant 0 : index
    %c0_35 = arith.constant 0 : index
    %100 = vector.load %arg7[%c0_34, %c0_35] : memref<8x144xf32, #tpu.memory_space<vmem>>, vector<8x144xf32>
    %cst_36 = arith.constant dense<0.000000e+00> : vector<8x256xf32>
    %101 = tpu.matmul %100, %99, %cst_36 {dimension_numbers = #tpu.dot_dimension_numbers<[1], [0], [0], [1], [0, 0, 1, 1], [], []>} : vector<8x144xf32>, vector<144x256xf32>, vector<8x256xf32> -> vector<8x256xf32>
    %c16 = arith.constant 16 : index
    %c128_37 = arith.constant 128 : index
    %102 = vector.load %arg12[%c16, %c128_37] : memref<32x512xf32, #tpu.memory_space<vmem>>, vector<8x256xf32>
    tpu.vector_store %arg12[%c16, %c128_37], %101 {strides = array<i32>} : memref<32x512xf32, #tpu.memory_space<vmem>>, vector<8x256xf32>,
    %c0_38 = arith.constant 0 : index
    %c0_39 = arith.constant 0 : index
    %103 = vector.load %arg12[%c0_38, %c0_39] : memref<32x512xf32, #tpu.memory_space<vmem>>, vector<24x512xf32>
    %c0_40 = arith.constant 0 : index
    %c0_41 = arith.constant 0 : index
    %104 = vector.load %arg8[%c0_40, %c0_41] : memref<24x1xf32, #tpu.memory_space<vmem>>, vector<24x1xf32>
    %105 = vector.broadcast %104 : vector<24x1xf32> to vector<24x512xf32>
    %106 = arith.mulf %103, %105 : vector<24x512xf32>
    %c0_42 = arith.constant 0 : index
    %c0_43 = arith.constant 0 : index
    %107 = vector.load %arg9[%c0_42, %c0_43] : memref<24x1xf32, #tpu.memory_space<vmem>>, vector<24x1xf32>
    %108 = vector.broadcast %107 : vector<24x1xf32> to vector<24x512xf32>
    %109 = arith.addf %106, %108 : vector<24x512xf32>
    %cst_44 = arith.constant 0.000000e+00 : f32
    %110 = vector.broadcast %cst_44 : f32 to vector<24x512xf32>
    %111 = arith.maximumf %109, %110 : vector<24x512xf32>
    %cst_45 = arith.constant 0.000000e+00 : f32
    %112 = vector.shape_cast %28 : vector<1x512xi1> to vector<1x512xi1>
    %113 = vector.broadcast %112 : vector<1x512xi1> to vector<24x512xi1>
    %114 = vector.broadcast %cst_45 : f32 to vector<24x512xf32>
    %115 = arith.select %113, %111, %114 : vector<24x512xi1>, vector<24x512xf32>
    %cst_46 = arith.constant 0.000000e+00 : f32
    %116 = vector.shape_cast %31 : vector<1x512xi1> to vector<1x512xi1>
    %117 = vector.broadcast %116 : vector<1x512xi1> to vector<24x512xi1>
    %118 = vector.broadcast %cst_46 : f32 to vector<24x512xf32>
    %119 = arith.select %117, %111, %118 : vector<24x512xi1>, vector<24x512xf32>
    %cst_47 = arith.constant 0.000000e+00 : f32
    %120 = vector.shape_cast %34 : vector<1x512xi1> to vector<1x512xi1>
    %121 = vector.broadcast %120 : vector<1x512xi1> to vector<24x512xi1>
    %122 = vector.broadcast %cst_47 : f32 to vector<24x512xf32>
    %123 = arith.select %121, %111, %122 : vector<24x512xi1>, vector<24x512xf32>
    %124 = vector.extract_strided_slice %119 {offsets = [0, 111], sizes = [24, 256], strides = [1, 1]} : vector<24x512xf32> to vector<24x256xf32>
    %125 = vector.extract_strided_slice %115 {offsets = [0, 112], sizes = [24, 256], strides = [1, 1]} : vector<24x512xf32> to vector<24x256xf32>
    %126 = vector.extract_strided_slice %123 {offsets = [0, 113], sizes = [24, 256], strides = [1, 1]} : vector<24x512xf32> to vector<24x256xf32>
    %127 = vector.extract_strided_slice %119 {offsets = [0, 127], sizes = [24, 256], strides = [1, 1]} : vector<24x512xf32> to vector<24x256xf32>
    %128 = vector.extract_strided_slice %115 {offsets = [0, 128], sizes = [24, 256], strides = [1, 1]} : vector<24x512xf32> to vector<24x256xf32>
    %129 = vector.extract_strided_slice %123 {offsets = [0, 129], sizes = [24, 256], strides = [1, 1]} : vector<24x512xf32> to vector<24x256xf32>
    %130 = vector.extract_strided_slice %119 {offsets = [0, 143], sizes = [24, 256], strides = [1, 1]} : vector<24x512xf32> to vector<24x256xf32>
    %131 = vector.extract_strided_slice %115 {offsets = [0, 144], sizes = [24, 256], strides = [1, 1]} : vector<24x512xf32> to vector<24x256xf32>
    %132 = vector.extract_strided_slice %123 {offsets = [0, 145], sizes = [24, 256], strides = [1, 1]} : vector<24x512xf32> to vector<24x256xf32>
    %133 = tpu.concatenate %124, %125, %126, %127, %128, %129, %130, %131, %132 in 0 : vector<24x256xf32>, vector<24x256xf32>, vector<24x256xf32>, vector<24x256xf32>, vector<24x256xf32>, vector<24x256xf32>, vector<24x256xf32>, vector<24x256xf32>, vector<24x256xf32> -> vector<216x256xf32>
    %c0_48 = arith.constant 0 : index
    %c0_49 = arith.constant 0 : index
    %134 = vector.load %arg10[%c0_48, %c0_49] : memref<8x216xf32, #tpu.memory_space<vmem>>, vector<8x216xf32>
    %cst_50 = arith.constant dense<0.000000e+00> : vector<8x256xf32>
    %135 = tpu.matmul %134, %133, %cst_50 {dimension_numbers = #tpu.dot_dimension_numbers<[1], [0], [0], [1], [0, 0, 1, 1], [], []>} : vector<8x216xf32>, vector<216x256xf32>, vector<8x256xf32> -> vector<8x256xf32>
    %c24 = arith.constant 24 : index
    %c128_51 = arith.constant 128 : index
    %136 = vector.load %arg12[%c24, %c128_51] : memref<32x512xf32, #tpu.memory_space<vmem>>, vector<8x256xf32>
    tpu.vector_store %arg12[%c24, %c128_51], %135 {strides = array<i32>} : memref<32x512xf32, #tpu.memory_space<vmem>>, vector<8x256xf32>,
    %c0_52 = arith.constant 0 : index
    %c128_53 = arith.constant 128 : index
    %137 = vector.load %arg12[%c0_52, %c128_53] : memref<32x512xf32, #tpu.memory_space<vmem>>, vector<32x256xf32>
    %c0_54 = arith.constant 0 : index
    %c0_55 = arith.constant 0 : index
    %c0_56 = arith.constant 0 : index
    %138 = vector.load %arg11[%c0_54, %c0_55, %c0_56] : memref<1x32x256xf32, #tpu.memory_space<vmem>>, vector<1x32x256xf32>
    %139 = vector.shape_cast %138 : vector<1x32x256xf32> to vector<32x256xf32>
    %140 = vector.shape_cast %137 : vector<32x256xf32> to vector<1x32x256xf32>
    tpu.vector_store %arg11[%c0_54, %c0_55, %c0_56], %140 {strides = array<i32>} : memref<1x32x256xf32, #tpu.memory_space<vmem>>, vector<1x32x256xf32>,
    return
  }
  func.func @transform_0(%arg0: i32) -> (i32, i32, i32) {
    %c0_i32 = arith.constant 0 : i32
    %c0_i32_0 = arith.constant 0 : i32
    %c0_i32_1 = arith.constant 0 : i32
    return %arg0, %c0_i32, %c0_i32_0 : i32, i32, i32
  }
  func.func @transform_1(%arg0: i32) -> (i32, i32) {
    %c0_i32 = arith.constant 0 : i32
    %c0_i32_0 = arith.constant 0 : i32
    %c0_i32_1 = arith.constant 0 : i32
    return %c0_i32, %c0_i32_0 : i32, i32
  }
  func.func @transform_2(%arg0: i32) -> (i32, i32) {
    %c0_i32 = arith.constant 0 : i32
    %c0_i32_0 = arith.constant 0 : i32
    %c0_i32_1 = arith.constant 0 : i32
    return %c0_i32, %c0_i32_0 : i32, i32
  }
  func.func @transform_3(%arg0: i32) -> (i32, i32) {
    %c0_i32 = arith.constant 0 : i32
    %c0_i32_0 = arith.constant 0 : i32
    %c0_i32_1 = arith.constant 0 : i32
    return %c0_i32, %c0_i32_0 : i32, i32
  }
  func.func @transform_4(%arg0: i32) -> (i32, i32) {
    %c0_i32 = arith.constant 0 : i32
    %c0_i32_0 = arith.constant 0 : i32
    %c0_i32_1 = arith.constant 0 : i32
    return %c0_i32, %c0_i32_0 : i32, i32
  }
  func.func @transform_5(%arg0: i32) -> (i32, i32) {
    %c0_i32 = arith.constant 0 : i32
    %c0_i32_0 = arith.constant 0 : i32
    %c0_i32_1 = arith.constant 0 : i32
    return %c0_i32, %c0_i32_0 : i32, i32
  }
  func.func @transform_6(%arg0: i32) -> (i32, i32) {
    %c0_i32 = arith.constant 0 : i32
    %c0_i32_0 = arith.constant 0 : i32
    %c0_i32_1 = arith.constant 0 : i32
    return %c0_i32, %c0_i32_0 : i32, i32
  }
  func.func @transform_7(%arg0: i32) -> (i32, i32) {
    %c0_i32 = arith.constant 0 : i32
    %c0_i32_0 = arith.constant 0 : i32
    %c0_i32_1 = arith.constant 0 : i32
    return %c0_i32, %c0_i32_0 : i32, i32
  }
  func.func @transform_8(%arg0: i32) -> (i32, i32) {
    %c0_i32 = arith.constant 0 : i32
    %c0_i32_0 = arith.constant 0 : i32
    %c0_i32_1 = arith.constant 0 : i32
    return %c0_i32, %c0_i32_0 : i32, i32
  }
  func.func @transform_9(%arg0: i32) -> (i32, i32) {
    %c0_i32 = arith.constant 0 : i32
    %c0_i32_0 = arith.constant 0 : i32
    %c0_i32_1 = arith.constant 0 : i32
    return %c0_i32, %c0_i32_0 : i32, i32
  }
  func.func @transform_10(%arg0: i32) -> (i32, i32, i32) {
    %c0_i32 = arith.constant 0 : i32
    %c0_i32_0 = arith.constant 0 : i32
    %c0_i32_1 = arith.constant 0 : i32
    return %arg0, %c0_i32, %c0_i32_0 : i32, i32, i32
  }
}

</mosaic_0001>

<bundles_post_ra>
// kernel: dense_block_forward.1
= control target key start
LH: loop header
LB: loop body
LE: loop exit
PB: predicated region body
PF: predicated region fallthrough
CT: control target
= control target key end

     0   :  { %s2931_s13 = smov 0   ;;  %s3732_s0 = inlined_call_operand.vmem [shape: f32[2,8,256], index: 0, kind: input, shape index: {}]   ;;  %s3733_s1 = inlined_call_operand.vmem [shape: f32[8,1], index: 1, kind: input, shape index: {}]   ;;  %s3734_s2 = inlined_call_operand.vmem [shape: f32[8,1], index: 2, kind: input, shape index: {}]   ;;  %s3735_s3 = inlined_call_operand.vmem [shape: f32[8,72], index: 3, kind: input, shape index: {}]   ;;  %s3736_s4 = inlined_call_operand.vmem [shape: f32[16,1], index: 4, kind: input, shape index: {}]   ;;  %s3737_s5 = inlined_call_operand.vmem [shape: f32[16,1], index: 5, kind: input, shape index: {}]   ;;  %s3738_s6 = inlined_call_operand.vmem [shape: f32[8,144], index: 6, kind: input, shape index: {}]   ;;  %s3739_s7 = inlined_call_operand.vmem [shape: f32[24,1], index: 7, kind: input, shape index: {}]   ;;  %s3740_s8 = inlined_call_operand.vmem [shape: f32[24,1], index: 8, kind: input, shape index: {}]   ;;  %s3741_s9 = inlined_call_operand.vmem [shape: f32[8,216], index: 9, kind: input, shape index: {}]   ;;  %s3742_s10 = inlined_call_operand.vmem [shape: f32[2,32,256], index: 10, kind: output, shape index: {}]  }
   0x1 LB: > { %s2021_s14 = sadd.s32 4294967295, %s2863_s13   ;;  %p2025_p0 = scmp.ge.s32.totalorder %s2863_s13, 1  ;;  %s2863_s13 = sphi %s2931_s13, %s20_s13  }
   0x2   : > { %p312_p1 = scmp.lt.s32.totalorder %s2863_s13, 3 }
   0x4   : > { %p313_p2 = pnand %p2025_p0, %p312_p1 }
   0x5   : > { %v467_v0 = vld [vmem:[%s3733_s1] sm:$0xff] (!%p313_p2)  ;;  %p350_p3 = scmp.lt.s32.totalorder (!%p313_p2), %s2021_s14, 1  ;;  %v2865_v1 = vmov (!%p313_p2), 0   ;;  %v2866_v3 = vmov (!%p313_p2), 0.0   ;;  %s2867_s21 = smov (!%p313_p2), 127   ;;  %v380_v6 = vlaneseq (!%p313_p2)  ;;  %vm536_vm4 = vcmask (!%p313_p2), 1039360  }
   0x6   : > { %316 = sbr.rel (%p313_p2) target bundleno = 1718 (0x6b6), region = 60  ;;  %2163 = vset.pattern.permute.xlu0 (!%p313_p2), %v2865_v1  ;;  %2259 = vset.pattern.permute.xlu1 (!%p313_p2), %v2865_v1  ;;  %v477_v2 = vld [vmem:[%s3734_s2] sm:$0xff] (!%p313_p2)  ;;  %s2868_s28 = smov (!%p313_p2), 112   ;;  %vm567_vm5 = vcmask (!%p313_p2), 908288   ;;  %vm548_vm6 = vcmask (!%p313_p2), 1031168   ;;  %vm560_vm7 = vcmask (!%p313_p2), 916480  }
   0x7   : > { %470 = vperm.xlu0 (!%p313_p2), %2163, %v467_v0   ;;  %768 = vmatprep.mubr.f32.mxu1 (!%p313_p2), %v2866_v3  ;;  %s2869_s29 = smov (!%p313_p2), 126   ;;  %s2870_s30 = smov (!%p313_p2), 110   ;;  %v381_v7 = vand.u32 (!%p313_p2), 127, %v380_v6  ;;  %vm576_vm8 = vcmask (!%p313_p2), 900096   ;;  %vm596_vm9 = vcmask (!%p313_p2), 777216   ;;  %vm586_vm10 = vcmask (!%p313_p2), 785408  }
   0x8   : > { %530 = vrot.lane.b32.xlu1 (!%p313_p2), %v2866_v3, %s2867_s21  ;;  %s2871_s11 = smov (!%p313_p2), 111   ;;  %s2872_s12 = smov (!%p313_p2), 95   ;;  %vm605_vm11 = vcmask (!%p313_p2), 769024   ;;  %vm663_vm12 = vcmask (!%p313_p2), 138240   ;;  %vm700_vm13 = vcmask (!%p313_p2), 588800   ;;  %vm1185_vm14 = vcmask (!%p313_p2), 130048  }
   0x9   : > { %v382_v8 = vadd.s32 (!%p313_p2), 256, %v381_v7  ;;  %v398_v13 = vand.u32 (!%p313_p2), 15, %v381_v7  ;;  %s2874_s15 = smov (!%p313_p2), 94   ;;  %s2875_s16 = smov (!%p313_p2), 17   ;;  %vm1873_vm15 = vcmask (!%p313_p2), 719872  }
   0xb   : > { %480 = vperm.xlu0 (!%p313_p2), %2163, %v477_v2   ;;  %v2031_v9 = vadd.s32 (!%p313_p2), 4294967168, %v382_v8  ;;  %vm2972_vm0 = vcmp.ne.s32.totalorder (!%p313_p2), %v398_v13, 0  ;;  %vm2986_vm2 = vcmp.ne.s32.totalorder (!%p313_p2), %v398_v13, 15 }
   0xc   : > { %554 = vrot.lane.b32.xlu1 (!%p313_p2), %v2866_v3, %s2868_s28 }
   0xd   : > { %s3752_s14 = smov (!%p350_p3, %s2021_s14), 1  ;;  %v405_v14 = vand.u32 15, %v2031_v9 }
   0xe   : > { %s2038_s19 = sshll.u32 %s3752_s14, 4  ;;  %s2039_s20 = sshll.u32 %s3752_s14, 6 }
   0xf   : > { %s354_s24 = scalar_lea.vmem %s3732_s0, %s2038_s19  ;;  %s2954_s27 = scalar_lea.vmem %s3742_s10, %s2039_s20  ;;  %542 = vrot.lane.b32.xlu0 %v2866_v3, %s2869_s29  ;;  %vm2976_vm1 = vcmp.ne.s32.totalorder %v405_v14, 0  ;;  %vm2990_vm3 = vcmp.ne.s32.totalorder %v405_v14, 15 }
  0x10   : > { %v2956_v4 = vld [vmem:[%s354_s24] sm:$0xff]  ;;  %v2958_v5 = vld [vmem:[%s354_s24 + $0x8] sm:$0xff]  ;;  %s2873_s14 = smov 96  }
  0x11   : > { %1958 = vst [vmem:[%s2954_s27] sm:$0xff] %v2956_v4  ;;  %1959 = vst [vmem:[%s2954_s27 + $0x8] sm:$0xff] %v2958_v5 }
  0x13   : > { %574 = vrot.lane.b32.xlu0 %v2866_v3, %s2870_s30 }
  0x7a   : > { %v531_v31 = vpop.permute.xlu1 %530 }
  0x7e   : > { %v555_v33 = vpop.permute.xlu1 %554 }
  0x86   : > { %v471_v10 = vpop.permute.xlu0 %470 }
  0x87   : > { %v474_v11 = vmul.f32 %v471_v10, %v2956_v4  ;;  %v475_v12 = vmul.f32 %v471_v10, %v2958_v5 }
  0x8a   : > { %v481_v15 = vpop.permute.xlu0 %480 }
  0x8b   : > { %v484_v16 = vadd.f32 %v481_v15, %v474_v11  ;;  %v485_v17 = vadd.f32 %v481_v15, %v475_v12 }
  0x8d   : > { %v488_v18 = vmax.f32 %v484_v16, 0.0  ;;  %v489_v19 = vmax.f32 %v485_v17, 0.0 }
  0x8e   : > { %v543_v32 = vpop.permute.xlu0 %542 }
  0x8f   : > { %v2169_v22 = vpack.i.bf16 %v489_v19, %v488_v18  ;;  %v524_v23 = vsel %vm2972_vm0, %v488_v18, 0.0  ;;  %v525_v24 = vsel %vm2976_vm1, %v489_v19, 0.0  ;;  %v512_v28 = vsel %vm2986_vm2, %v488_v18, 0.0 }
  0x90   : > { %v2174_v27 = vpack.i.bf16 %v525_v24, %v524_v23  ;;  %v513_v29 = vsel %vm2990_vm3, %v489_v19, 0.0 }
  0x91   : > { %2170 = vrot.lane.b32.xlu0 %v2169_v22, %s2871_s11  ;;  %2165 = vrot.lane.b32.xlu1 %v2169_v22, %s2867_s21  ;;  %v2184_v30 = vpack.i.bf16 %v513_v29, %v512_v28 }
  0x92   : > { %v575_v34 = vpop.permute.xlu0 %574 }
  0x95   : > { %2180 = vrot.lane.b32.xlu1 %v2169_v22, %s2872_s12  ;;  %2175 = vrot.lane.b32.xlu0 %v2174_v27, %s2869_s29 }
  0x99   : > { %584 = vrot.lane.b32.xlu0 %v2866_v3, %s2873_s14  ;;  %2185 = vrot.lane.b32.xlu1 %v2184_v30, %s2868_s28 }
  0x9d   : > { %594 = vrot.lane.b32.xlu0 %v2866_v3, %s2872_s12  ;;  %2190 = vrot.lane.b32.xlu1 %v2174_v27, %s2870_s30 }
  0xa1   : > { %601 = vrot.lane.b32.xlu0 %v525_v24, %s2874_s15  ;;  %2195 = vrot.lane.b32.xlu1 %v2184_v30, %s2873_s14 }
  0xa5   : > { %2200 = vrot.lane.b32.xlu0 %v2184_v30, %s2875_s16  ;;  %599 = vrot.lane.b32.xlu1 %v524_v23, %s2874_s15  ;;  %v786_v30 = vld [vmem:[%s3736_s4 + $0x8] sm:$0xff] }
  0xa9   : > { %603 = vrot.lane.b32.xlu1 %v2866_v3, %s2874_s15 }
 0x103   : > { %v2171_v35 = vpop.permute.xlu0 %2170  ;;  %v2166_v36 = vpop.permute.xlu1 %2165 }
 0x104   : > { %v2173_v37 = vunpack.i.h.bf16 %v2171_v35  ;;  %v2172_v38 = vunpack.i.l.bf16 %v2171_v35  ;;  %v2168_v39 = vunpack.i.h.bf16 %v2166_v36  ;;  %v2167_v40 = vunpack.i.l.bf16 %v2166_v36 }
 0x106   : > { %v537_v41 = vsel %vm536_vm4, %v531_v31, %v2167_v40  ;;  %v538_v42 = vsel %vm536_vm4, %v2167_v40, %v2168_v39  ;;  %v568_v49 = vsel %vm567_vm5, %v2172_v38, %v2173_v37  ;;  %v785_v31 = vld [vmem:[%s3736_s4] sm:$0xff] }
 0x107   : > { %v2181_v43 = vpop.permute.xlu1 %2180  ;;  %v2176_v44 = vpop.permute.xlu0 %2175  ;;  %v2209_v45 = vpack.i.bf16 %v537_v41, %v2866_v3  ;;  %v2204_v46 = vpack.i.bf16 %v2168_v39, %v538_v42  ;;  %v2214_v53 = vpack.i.bf16 %v2173_v37, %v568_v49 }
 0x108   : > { %v2178_v47 = vunpack.i.h.bf16 %v2176_v44  ;;  %v2177_v48 = vunpack.i.l.bf16 %v2176_v44  ;;  %v2183_v1 = vunpack.i.h.bf16 %v2181_v43  ;;  %v2182_v6 = vunpack.i.l.bf16 %v2181_v43 }
 0x109   : > { %2210 = vrot.lane.b32.xlu0 %v2209_v45, %s2875_s16  ;;  %2205 = vrot.lane.b32.xlu1 %v2204_v46, %s2875_s16 }
 0x10a   : > { %v550_v50 = vsel %vm548_vm6, %v2177_v48, %v2178_v47  ;;  %v549_v58 = vsel %vm548_vm6, %v543_v32, %v2177_v48  ;;  %v597_v15 = vsel %vm596_vm9, %v2182_v6, %v2183_v1  ;;  %v806_v32 = vld [vmem:[%s3737_s5 + $0x8] sm:$0xff] }
 0x10b   : > { %v585_v51 = vpop.permute.xlu0 %584  ;;  %v2186_v52 = vpop.permute.xlu1 %2185  ;;  %v2219_v54 = vpack.i.bf16 %v2178_v47, %v550_v50 }
 0x10c   : > { %v2188_v55 = vunpack.i.h.bf16 %v2186_v52  ;;  %v2187_v56 = vunpack.i.l.bf16 %v2186_v52 }
 0x10d   : > { %2215 = vrot.lane.b32.xlu0 %v2214_v53, %s2875_s16  ;;  %2220 = vrot.lane.b32.xlu1 %v2219_v54, %s2875_s16 }
 0x10e   : > { %v562_v57 = vsel %vm560_vm7, %v2187_v56, %v2188_v55  ;;  %v561_v59 = vsel %vm560_vm7, %v555_v33, %v2187_v56  ;;  %v805_v33 = vld [vmem:[%s3737_s5] sm:$0xff] }
 0x10f   : > { %v2191_v60 = vpop.permute.xlu1 %2190  ;;  %v2224_v61 = vpack.i.bf16 %v2188_v55, %v562_v57  ;;  %v2239_v62 = vpack.i.bf16 %v561_v59, %v549_v58  ;;  %v595_v2 = vpop.permute.xlu0 %594 }
 0x110   : > { %v2193_v63 = vunpack.i.h.bf16 %v2191_v60  ;;  %v2192_v0 = vunpack.i.l.bf16 %v2191_v60  ;;  %v598_v12 = vsel %vm596_vm9, %v2183_v1, %v595_v2 }
 0x111   : > { %2225 = vrot.lane.b32.xlu0 %v2224_v61, %s2875_s16  ;;  %2240 = vrot.lane.b32.xlu1 %v2239_v62, %s2875_s16  ;;  %v2234_v18 = vpack.i.bf16 %v598_v12, %v597_v15 }
 0x112   : > { %v2229_v7 = vpack.i.bf16 %v2192_v0, %v2172_v38  ;;  %v577_v8 = vsel %vm576_vm8, %v2192_v0, %v2193_v63  ;;  %v578_v9 = vsel %vm576_vm8, %v2193_v63, %v575_v34 }
 0x113   : > { %v2196_v10 = vpop.permute.xlu1 %2195  ;;  %v2244_v11 = vpack.i.bf16 %v578_v9, %v577_v8  ;;  %v602_v23 = vpop.permute.xlu0 %601 }
 0x114   : > { %v2198_v13 = vunpack.i.h.bf16 %v2196_v10  ;;  %v2197_v14 = vunpack.i.l.bf16 %v2196_v10 }
 0x115   : > { %2230 = vrot.lane.b32.xlu0 %v2229_v7, %s2875_s16  ;;  %2245 = vrot.lane.b32.xlu1 %v2244_v11, %s2875_s16 }
 0x116   : > { %v587_v16 = vsel %vm586_vm10, %v2197_v14, %v2198_v13  ;;  %v588_v17 = vsel %vm586_vm10, %v2198_v13, %v585_v51  ;;  %v2254_v24 = vpack.i.bf16 %v2182_v6, %v2197_v14 }
 0x117   : > { %v600_v19 = vpop.permute.xlu1 %599  ;;  %v2249_v22 = vpack.i.bf16 %v588_v17, %v587_v16  ;;  %v2201_v34 = vpop.permute.xlu0 %2200 }
 0x118   : > { %v606_v27 = vsel %vm605_vm11, %v600_v19, %v602_v23  ;;  %v2203_v35 = vunpack.i.h.bf16 %v2201_v34  ;;  %v2202_v36 = vunpack.i.l.bf16 %v2201_v34 }
 0x119   : > { %2235 = vrot.lane.b32.xlu0 %v2234_v18, %s2875_s16  ;;  %2250 = vrot.lane.b32.xlu1 %v2249_v22, %s2875_s16 }
 0x11a   : > { %v665_v43 = vsel %vm663_vm12, %v2202_v36, %v2203_v35 }
 0x11b   : > { %v604_v28 = vpop.permute.xlu1 %603 }
 0x11c   : > { %v607_v29 = vsel %vm605_vm11, %v602_v23, %v604_v28 }
 0x11d   : > { %659 = vrot.lane.b32.xlu0 %v606_v27, %s2875_s16  ;;  %2255 = vrot.lane.b32.xlu1 %v2254_v24, %s2875_s16 }
 0x121   : > { %657 = vrot.lane.b32.xlu0 %v600_v19, %s2875_s16  ;;  %661 = vrot.lane.b32.xlu1 %v607_v29, %s2875_s16 }
 0x125   : > { %794 = vperm.xlu0 %2163, %v786_v30   ;;  %789 = vperm.xlu1 %2259, %v785_v31  }
 0x129   : > { %814 = vperm.xlu0 %2163, %v806_v32   ;;  %809 = vperm.xlu1 %2259, %v805_v33  }
 0x17b   : > { %v2211_v37 = vpop.permute.xlu0 %2210  ;;  %v2206_v38 = vpop.permute.xlu1 %2205 }
 0x17c   : > { %v2213_v39 = vunpack.i.h.bf16 %v2211_v37  ;;  %v2212_v40 = vunpack.i.l.bf16 %v2211_v37  ;;  %v2208_v41 = vunpack.i.h.bf16 %v2206_v38  ;;  %v2207_v42 = vunpack.i.l.bf16 %v2206_v38 }
 0x17e   : > { %v667_v44 = vsel %vm663_vm12, %v2207_v42, %v2208_v41  ;;  %v664_v45 = vsel %vm663_vm12, %v2212_v40, %v2202_v36  ;;  %v666_v46 = vsel %vm663_vm12, %v2213_v39, %v2207_v42  ;;  %v608_v41 = vld [vmem:[%s3735_s3] sm:$0xff] }
 0x17f   : > { %v2216_v47 = vpop.permute.xlu0 %2215  ;;  %v2221_v48 = vpop.permute.xlu1 %2220  ;;  %v2040_v49 = vpack.c.bf16 %v667_v44, %v665_v43  ;;  %v2042_v50 = vpack.c.bf16 %v666_v46, %v664_v45 }
 0x180   : > { %v2223_v51 = vunpack.i.h.bf16 %v2221_v48  ;;  %v2222_v52 = vunpack.i.l.bf16 %v2221_v48  ;;  %v2218_v59 = vunpack.i.h.bf16 %v2216_v47  ;;  %v2217_v60 = vunpack.i.l.bf16 %v2216_v47 }
 0x181   : > { %2041 = vmatprep.subr.bf16.mxu1 %v2040_v49 }
 0x182   : > { %2043 = vmatpush1.bf16.msra.mxu1 %v2042_v50  ;;  %v669_v61 = vsel %vm663_vm12, %v2222_v52, %v2223_v51  ;;  %v673_v12 = vsel %vm663_vm12, %v2217_v60, %v2218_v59 }
 0x183   : > { %v2226_v53 = vpop.permute.xlu0 %2225  ;;  %v2241_v54 = vpop.permute.xlu1 %2240 }
 0x184   : > { %v2228_v55 = vunpack.i.h.bf16 %v2226_v53  ;;  %v2227_v56 = vunpack.i.l.bf16 %v2226_v53  ;;  %v2243_v57 = vunpack.i.h.bf16 %v2241_v54  ;;  %v2242_v58 = vunpack.i.l.bf16 %v2241_v54 }
 0x186   : > { %v671_v62 = vsel %vm663_vm12, %v2227_v56, %v2228_v55  ;;  %v668_v63 = vsel %vm663_vm12, %v2242_v58, %v2222_v52  ;;  %v670_v0 = vsel %vm663_vm12, %v2243_v57, %v2227_v56 }
 0x187   : > { %v2231_v1 = vpop.permute.xlu0 %2230  ;;  %v2246_v2 = vpop.permute.xlu1 %2245  ;;  %v2044_v6 = vpack.c.bf16 %v671_v62, %v669_v61  ;;  %v2046_v7 = vpack.c.bf16 %v670_v0, %v668_v63 }
 0x188   : > { %v2233_v8 = vunpack.i.h.bf16 %v2231_v1  ;;  %v2232_v9 = vunpack.i.l.bf16 %v2231_v1  ;;  %v2248_v10 = vunpack.i.h.bf16 %v2246_v2  ;;  %v2247_v11 = vunpack.i.l.bf16 %v2246_v2 }
 0x189   : > { %2045 = vmatprep.subr.bf16.mxu1 %v2044_v6 }
 0x18a   : > { %2047 = vmatpush1.bf16.msra.mxu1 %v2046_v7  ;;  %v675_v13 = vsel %vm663_vm12, %v2247_v11, %v2248_v10  ;;  %v672_v14 = vsel %vm663_vm12, %v2232_v9, %v2217_v60  ;;  %v674_v15 = vsel %vm663_vm12, %v2233_v8, %v2247_v11 }
 0x18b   : > { %v2236_v16 = vpop.permute.xlu0 %2235  ;;  %v2251_v17 = vpop.permute.xlu1 %2250  ;;  %v2048_v18 = vpack.c.bf16 %v675_v13, %v673_v12  ;;  %v2050_v19 = vpack.c.bf16 %v674_v15, %v672_v14 }
 0x18c   : > { %v2238_v22 = vunpack.i.h.bf16 %v2236_v16  ;;  %v2237_v23 = vunpack.i.l.bf16 %v2236_v16  ;;  %v2253_v24 = vunpack.i.h.bf16 %v2251_v17  ;;  %v2252_v27 = vunpack.i.l.bf16 %v2251_v17 }
 0x18d   : > { %2049 = vmatprep.subr.bf16.mxu1 %v2048_v18 }
 0x18e   : > { %2051 = vmatpush1.bf16.msra.mxu1 %v2050_v19  ;;  %v677_v28 = vsel %vm663_vm12, %v2252_v27, %v2253_v24  ;;  %v679_v29 = vsel %vm663_vm12, %v2237_v23, %v2238_v22 }
 0x18f   : > { %v660_v30 = vpop.permute.xlu0 %659  ;;  %v2256_v31 = vpop.permute.xlu1 %2255  ;;  %v2052_v32 = vpack.c.bf16 %v679_v29, %v677_v28 }
 0x190   : > { %v2258_v33 = vunpack.i.h.bf16 %v2256_v31  ;;  %v2257_v34 = vunpack.i.l.bf16 %v2256_v31 }
 0x191   : > { %2053 = vmatprep.subr.bf16.mxu1 %v2052_v32 }
 0x192   : > { %v676_v35 = vsel %vm663_vm12, %v2257_v34, %v2252_v27  ;;  %v678_v36 = vsel %vm663_vm12, %v2258_v33, %v2237_v23 }
 0x193   : > { %v662_v37 = vpop.permute.xlu1 %661  ;;  %v2054_v38 = vpack.c.bf16 %v678_v36, %v676_v35  ;;  %v658_v40 = vpop.permute.xlu0 %657 }
 0x194   : > { %v681_v39 = vsel %vm663_vm12, %v660_v30, %v662_v37  ;;  %v680_v42 = vsel %vm663_vm12, %v658_v40, %v660_v30 }
 0x195   : > { %2055 = vmatpush1.bf16.msra.mxu1 %v2054_v38 }
 0x196   : > { %720 = vmatprep.subr.mxu1 %v681_v39 }
 0x199   : > { %721 = vmatpush1.msra.mxu1 %v680_v42 }
 0x19a   : > { %2033 = vmatmul.mubr.msk.f32.vlgmr.msra.gmra.mrb[0].mxu1 %vm700_vm13, %v608_v41 }
 0x1a4   : > { %v790_v43 = vpop.permute.xlu1 %789  ;;  %v795_v56 = vpop.permute.xlu0 %794 }
 0x1a5   : > { %v798_v44 = vmul.f32 %v790_v43, %v2956_v4  ;;  %v799_v45 = vmul.f32 %v790_v43, %v2958_v5 }
 0x1a8   : > { %v810_v46 = vpop.permute.xlu1 %809  ;;  %v815_v60 = vpop.permute.xlu0 %814 }
 0x1a9   : > { %v818_v47 = vadd.f32 %v810_v46, %v798_v44  ;;  %v819_v48 = vadd.f32 %v810_v46, %v799_v45 }
 0x1ab   : > { %v826_v49 = vmax.f32 %v818_v47, 0.0  ;;  %v827_v50 = vmax.f32 %v819_v48, 0.0 }
 0x1ad   : > { %v2260_v51 = vpack.i.bf16 %v827_v50, %v826_v49  ;;  %v850_v52 = vsel %vm2972_vm0, %v826_v49, 0.0  ;;  %v851_v53 = vsel %vm2976_vm1, %v827_v50, 0.0  ;;  %v842_v4 = vsel %vm2986_vm2, %v826_v49, 0.0 }
 0x1ae   : > { %v2270_v54 = vpack.i.bf16 %v851_v53, %v850_v52  ;;  %v843_v5 = vsel %vm2990_vm3, %v827_v50, 0.0 }
 0x1af   : > { %2261 = vrot.lane.b32.xlu1 %v2260_v51, %s2867_s21  ;;  %v2280_v55 = vpack.i.bf16 %v843_v5, %v842_v4 }
 0x1b0   : > { %2271 = vrot.lane.b32.xlu0 %v2270_v54, %s2869_s29 }
 0x1b3   : > { %2266 = vrot.lane.b32.xlu1 %v2866_v3, %s2867_s21 }
 0x1b4   : > { %2276 = vrot.lane.b32.xlu0 %v2866_v3, %s2869_s29 }
 0x1b7   : > { %2281 = vrot.lane.b32.xlu1 %v2280_v55, %s2868_s28 }
 0x1b8   : > { %2291 = vrot.lane.b32.xlu0 %v2260_v51, %s2871_s11 }
 0x1bb   : > { %2286 = vrot.lane.b32.xlu1 %v2866_v3, %s2868_s28 }
 0x221   : > { %v2262_v14 = vpop.permute.xlu1 %2261 }
 0x222   : > { %v3128_v19 = vpop.permute.xlu0 %2271  ;;  %v2264_v22 = vunpack.i.h.bf16 %v2262_v14  ;;  %v2263_v23 = vunpack.i.l.bf16 %v2262_v14 }
 0x223   : > { %v2274_v34 = vunpack.i.h.bf16 %v3128_v19  ;;  %v2273_v35 = vunpack.i.l.bf16 %v3128_v19 }
 0x224   : > { %v876_v31 = vsel %vm536_vm4, %v2263_v23, %v2264_v22 }
 0x225   : > { %v2267_v17 = vpop.permute.xlu1 %2266  ;;  %v2385_v32 = vpack.i.bf16 %v2264_v22, %v876_v31  ;;  %v898_v40 = vsel %vm548_vm6, %v2273_v35, %v2274_v34 }
 0x226   : > { %v2277_v28 = vpop.permute.xlu0 %2276  ;;  %v2390_v41 = vpack.i.bf16 %v2274_v34, %v898_v40  ;;  %v2268_v45 = vunpack.i.l.bf16 %v2267_v17  ;;  %v2269_v48 = vunpack.i.h.bf16 %v2267_v17 }
 0x228   : > { %v875_v53 = vsel %vm536_vm4, %v2268_v45, %v2263_v23 }
 0x229   : > { %v2282_v27 = vpop.permute.xlu1 %2281 }
 0x22a   : > { %v2284_v29 = vunpack.i.h.bf16 %v2282_v27  ;;  %v2283_v30 = vunpack.i.l.bf16 %v2282_v27  ;;  %v2292_v36 = vpop.permute.xlu0 %2291 }
 0x22b   : > { %v2294_v38 = vunpack.i.h.bf16 %v2292_v36  ;;  %v2293_v39 = vunpack.i.l.bf16 %v2292_v36 }
 0x22c   : > { %v920_v33 = vsel %vm560_vm7, %v2283_v30, %v2284_v29 }
 0x22d   : > { %v2395_v37 = vpack.i.bf16 %v2284_v29, %v920_v33  ;;  %v931_v42 = vsel %vm567_vm5, %v2293_v39, %v2294_v38  ;;  %v2287_v44 = vpop.permute.xlu1 %2286 }
 0x22e   : > { %v2400_v43 = vpack.i.bf16 %v2294_v38, %v931_v42 }
 0x26d   : > { %v3095_v57 = vpop.f32.mrb[0].mxu1 }
 0x26e   : > { %v802_v58 = vmul.f32 %v795_v56, %v3095_v57  ;;  %1960 = vst [vmem:[%s2954_s27 + $0x10] sm:$0xff] %v3095_v57  ;;  %v3100_v59 = vpop.f32.mrb[1].mxu1 }
 0x26f   : > { %v803_v61 = vmul.f32 %v795_v56, %v3100_v59  ;;  %1961 = vst [vmem:[%s2954_s27 + $0x18] sm:$0xff] %v3100_v59 }
 0x270   : > { %v822_v62 = vadd.f32 %v815_v60, %v802_v58 }
 0x271   : > { %v823_v63 = vadd.f32 %v815_v60, %v803_v61  ;;  %v2279_v60 = vunpack.i.h.bf16 %v2277_v28  ;;  %v2278_v61 = vunpack.i.l.bf16 %v2277_v28 }
 0x272   : > { %v830_v0 = vmax.f32 %v822_v62, 0.0  ;;  %v2288_v62 = vunpack.i.l.bf16 %v2287_v44 }
 0x273   : > { %v831_v1 = vmax.f32 %v823_v63, 0.0 }
 0x274   : > { %v854_v2 = vsel %vm2972_vm0, %v830_v0, 0.0  ;;  %v846_v6 = vsel %vm2986_vm2, %v830_v0, 0.0  ;;  %v2345_v15 = vpack.i.bf16 %v830_v0, %v2866_v3 }
 0x275   : > { %v2305_v7 = vpack.i.bf16 %v831_v1, %v830_v0  ;;  %v855_v8 = vsel %vm2976_vm1, %v831_v1, 0.0  ;;  %v847_v10 = vsel %vm2990_vm3, %v831_v1, 0.0  ;;  %v2315_v12 = vpack.i.bf16 %v854_v2, %v2866_v3 }
 0x276   : > { %v2310_v9 = vpack.i.bf16 %v855_v8, %v854_v2  ;;  %v2325_v11 = vpack.i.bf16 %v847_v10, %v846_v6  ;;  %v2330_v13 = vpack.i.bf16 %v846_v6, %v2866_v3  ;;  %v2335_v16 = vpack.i.bf16 %v2866_v3, %v855_v8 }
 0x277   : > { %2306 = vrot.lane.b32.xlu1 %v2305_v7, %s2871_s11  ;;  %2296 = vrot.lane.b32.xlu0 %v2305_v7, %s2867_s21  ;;  %v2355_v18 = vpack.i.bf16 %v2866_v3, %v847_v10  ;;  %v2350_v24 = vpack.i.bf16 %v2866_v3, %v831_v1  ;;  %v2289_v7 = vunpack.i.h.bf16 %v2287_v44  ;;  %v897_v10 = vsel %vm548_vm6, %v2278_v61, %v2273_v35 }
 0x27b   : > { %2301 = vrot.lane.b32.xlu0 %v2270_v54, %s2870_s30  ;;  %2311 = vrot.lane.b32.xlu1 %v2310_v9, %s2869_s29 }
 0x27f   : > { %2316 = vrot.lane.b32.xlu1 %v2315_v12, %s2870_s30  ;;  %2326 = vrot.lane.b32.xlu0 %v2325_v11, %s2868_s28 }
 0x283   : > { %2321 = vrot.lane.b32.xlu1 %v2280_v55, %s2873_s14  ;;  %2331 = vrot.lane.b32.xlu0 %v2330_v13, %s2873_s14 }
 0x287   : > { %2346 = vrot.lane.b32.xlu1 %v2345_v15, %s2872_s12  ;;  %2336 = vrot.lane.b32.xlu0 %v2335_v16, %s2870_s30 }
 0x28b   : > { %2356 = vrot.lane.b32.xlu1 %v2355_v18, %s2873_s14  ;;  %2341 = vrot.lane.b32.xlu0 %v2260_v51, %s2872_s12 }
 0x28f   : > { %2361 = vrot.lane.b32.xlu1 %v2270_v54, %s2874_s15  ;;  %2351 = vrot.lane.b32.xlu0 %v2350_v24, %s2872_s12 }
 0x293   : > { %2371 = vrot.lane.b32.xlu1 %v2335_v16, %s2874_s15  ;;  %2366 = vrot.lane.b32.xlu0 %v2315_v12, %s2874_s15  ;;  %v919_v12 = vsel %vm560_vm7, %v2288_v62, %v2283_v30 }
 0x297   : > { %2386 = vrot.lane.b32.xlu1 %v2385_v32, %s2875_s16  ;;  %2376 = vrot.lane.b32.xlu0 %v2280_v55, %s2875_s16 }
 0x29b   : > { %2396 = vrot.lane.b32.xlu1 %v2395_v37, %s2875_s16  ;;  %2381 = vrot.lane.b32.xlu0 %v2866_v3, %s2875_s16 }
 0x29f   : > { %2406 = vrot.lane.b32.xlu1 %v2325_v11, %s2875_s16  ;;  %2391 = vrot.lane.b32.xlu0 %v2390_v41, %s2875_s16 }
 0x2a3   : > { %2401 = vrot.lane.b32.xlu0 %v2400_v43, %s2875_s16 }
 0x2e9   : > { %v2307_v46 = vpop.permute.xlu1 %2306  ;;  %v2297_v47 = vpop.permute.xlu0 %2296 }
 0x2ea   : > { %v2308_v49 = vunpack.i.l.bf16 %v2307_v46  ;;  %v2299_v50 = vunpack.i.h.bf16 %v2297_v47  ;;  %v2298_v51 = vunpack.i.l.bf16 %v2297_v47  ;;  %v2309_v0 = vunpack.i.h.bf16 %v2307_v46 }
 0x2ec   : > { %v2410_v52 = vpack.i.bf16 %v2308_v49, %v2293_v39  ;;  %v877_v54 = vsel %vm536_vm4, %v2269_v48, %v2298_v51  ;;  %v878_v56 = vsel %vm536_vm4, %v2298_v51, %v2299_v50  ;;  %v932_v18 = vsel %vm567_vm5, %v2308_v49, %v2309_v0 }
 0x2ed   : > { %v3153_v4 = vpop.permute.xlu0 %2301  ;;  %v2312_v5 = vpop.permute.xlu1 %2311  ;;  %v2415_v55 = vpack.i.bf16 %v877_v54, %v875_v53  ;;  %v2420_v63 = vpack.i.bf16 %v2299_v50, %v878_v56  ;;  %v2435_v30 = vpack.i.bf16 %v2309_v0, %v932_v18 }
 0x2ee   : > { %v2313_v58 = vunpack.i.l.bf16 %v2312_v5  ;;  %2411 = vrot.lane.b32.xlu0 %v2410_v52, %s2875_s16  ;;  %v2314_v19 = vunpack.i.h.bf16 %v2312_v5  ;;  %v2304_v38 = vunpack.i.h.bf16 %v3153_v4  ;;  %v2303_v39 = vunpack.i.l.bf16 %v3153_v4 }
 0x2ef   : > { %2416 = vrot.lane.b32.xlu1 %v2415_v55, %s2875_s16 }
 0x2f0   : > { %v899_v6 = vsel %vm548_vm6, %v2279_v60, %v2313_v58  ;;  %v900_v36 = vsel %vm548_vm6, %v2313_v58, %v2314_v19  ;;  %v947_v49 = vsel %vm576_vm8, %v2303_v39, %v2304_v38 }
 0x2f1   : > { %v3158_v1 = vpop.permute.xlu1 %2316  ;;  %v2327_v2 = vpop.permute.xlu0 %2326  ;;  %v2425_v11 = vpack.i.bf16 %v899_v6, %v897_v10  ;;  %v2440_v43 = vpack.i.bf16 %v2314_v19, %v900_v36 }
 0x2f2   : > { %v2329_v8 = vunpack.i.h.bf16 %v2327_v2  ;;  %v2328_v9 = vunpack.i.l.bf16 %v2327_v2  ;;  %2421 = vrot.lane.b32.xlu0 %v2420_v63, %s2875_s16  ;;  %v2318_v33 = vunpack.i.l.bf16 %v3158_v1  ;;  %v2319_v37 = vunpack.i.h.bf16 %v3158_v1 }
 0x2f4   : > { %v921_v13 = vsel %vm560_vm7, %v2289_v7, %v2328_v9  ;;  %v922_v17 = vsel %vm560_vm7, %v2328_v9, %v2329_v8  ;;  %v948_v46 = vsel %vm576_vm8, %v2304_v38, %v2318_v33  ;;  %v2450_v63 = vpack.i.bf16 %v2319_v37, %v2303_v39 }
 0x2f5   : > { %v2322_v14 = vpop.permute.xlu1 %2321  ;;  %v3165_v15 = vpop.permute.xlu0 %2331  ;;  %v2430_v16 = vpack.i.bf16 %v921_v13, %v919_v12  ;;  %v2455_v27 = vpack.i.bf16 %v2329_v8, %v922_v17  ;;  %v2445_v52 = vpack.i.bf16 %v948_v46, %v947_v49 }
 0x2f6   : > { %v2324_v22 = vunpack.i.h.bf16 %v2322_v14  ;;  %v2323_v23 = vunpack.i.l.bf16 %v2322_v14  ;;  %v2333_v24 = vunpack.i.l.bf16 %v3165_v15  ;;  %2426 = vrot.lane.b32.xlu0 %v2425_v11, %s2875_s16  ;;  %v2334_v47 = vunpack.i.h.bf16 %v3165_v15 }
 0x2f7   : > { %2431 = vrot.lane.b32.xlu1 %v2430_v16, %s2875_s16 }
 0x2f8   : > { %v965_v31 = vsel %vm586_vm10, %v2323_v23, %v2324_v22  ;;  %v966_v32 = vsel %vm586_vm10, %v2324_v22, %v2333_v24  ;;  %v2470_v58 = vpack.i.bf16 %v2334_v47, %v2323_v23 }
 0x2f9   : > { %v3172_v28 = vpop.permute.xlu1 %2346  ;;  %v2337_v29 = vpop.permute.xlu0 %2336  ;;  %v2460_v40 = vpack.i.bf16 %v966_v32, %v965_v31 }
 0x2fa   : > { %v2339_v34 = vunpack.i.h.bf16 %v2337_v29  ;;  %v2338_v35 = vunpack.i.l.bf16 %v2337_v29  ;;  %2456 = vrot.lane.b32.xlu0 %v2455_v27, %s2875_s16  ;;  %v2349_v55 = vunpack.i.h.bf16 %v3172_v28  ;;  %v2348_v56 = vunpack.i.l.bf16 %v3172_v28 }
 0x2fb   : > { %2436 = vrot.lane.b32.xlu1 %v2435_v30, %s2875_s16 }
 0x2fc   : > { %v949_v44 = vsel %vm576_vm8, %v2319_v37, %v2338_v35  ;;  %v950_v45 = vsel %vm576_vm8, %v2338_v35, %v2339_v34  ;;  %v1004_v35 = vld [vmem:[%s3738_s6 + $0x8] sm:$0xff] }
 0x2fd   : > { %v2357_v41 = vpop.permute.xlu1 %2356  ;;  %v3183_v42 = vpop.permute.xlu0 %2341  ;;  %v2465_v48 = vpack.i.bf16 %v950_v45, %v949_v44  ;;  %2034 = vmatprep.mubr.msk.f32.mxu1 %vm1185_vm14, %v1004_v35 }
 0x2fe   : > { %2461 = vrot.lane.b32.xlu0 %v2460_v40, %s2875_s16  ;;  %v2344_v53 = vunpack.i.h.bf16 %v3183_v42  ;;  %v2343_v54 = vunpack.i.l.bf16 %v3183_v42  ;;  %v2359_v60 = vunpack.i.h.bf16 %v2357_v41  ;;  %v2358_v2 = vunpack.i.l.bf16 %v2357_v41  ;;  %v1304_v42 = vld [vmem:[%s3740_s8] sm:$0xff] }
 0x2ff   : > { %2441 = vrot.lane.b32.xlu1 %v2440_v43, %s2875_s16 }
 0x300   : > { %v983_v7 = vsel %vm596_vm9, %v2343_v54, %v2344_v53  ;;  %v984_v8 = vsel %vm596_vm9, %v2344_v53, %v2348_v56  ;;  %v967_v16 = vsel %vm586_vm10, %v2334_v47, %v2358_v2  ;;  %v968_v17 = vsel %vm586_vm10, %v2358_v2, %v2359_v60  ;;  %v1275_v53 = vld [vmem:[%s3739_s7 + $0x8] sm:$0xff] }
 0x301   : > { %v2362_v50 = vpop.permute.xlu1 %2361  ;;  %v2352_v51 = vpop.permute.xlu0 %2351  ;;  %v2475_v14 = vpack.i.bf16 %v984_v8, %v983_v7  ;;  %v2485_v27 = vpack.i.bf16 %v968_v17, %v967_v16  ;;  %v2490_v37 = vpack.i.bf16 %v2349_v55, %v2343_v54  ;;  %v1305_v54 = vld [vmem:[%s3740_s8 + $0x8] sm:$0xff] }
 0x302   : > { %v2354_v4 = vunpack.i.h.bf16 %v2352_v51  ;;  %v2353_v5 = vunpack.i.l.bf16 %v2352_v51  ;;  %2466 = vrot.lane.b32.xlu0 %v2465_v48, %s2875_s16  ;;  %v2364_v9 = vunpack.i.h.bf16 %v2362_v50  ;;  %v2363_v10 = vunpack.i.l.bf16 %v2362_v50  ;;  %v1276_v50 = vld [vmem:[%s3739_s7 + $0x10] sm:$0xff]  ;;  %v1274_v51 = vld [vmem:[%s3739_s7] sm:$0xff] }
 0x303   : > { %2446 = vrot.lane.b32.xlu1 %v2445_v52, %s2875_s16  ;;  %v1306_v52 = vld [vmem:[%s3740_s8 + $0x10] sm:$0xff] }
 0x304   : > { %v985_v0 = vsel %vm596_vm9, %v2349_v55, %v2353_v5  ;;  %v986_v1 = vsel %vm596_vm9, %v2353_v5, %v2354_v4  ;;  %v999_v19 = vsel %vm605_vm11, %v2363_v10, %v2364_v9 }
 0x305   : > { %v2372_v61 = vpop.permute.xlu1 %2371  ;;  %v2367_v62 = vpop.permute.xlu0 %2366  ;;  %v2480_v11 = vpack.i.bf16 %v986_v1, %v985_v0 }
 0x306   : > { %v2368_v6 = vunpack.i.l.bf16 %v2367_v62  ;;  %2471 = vrot.lane.b32.xlu0 %v2470_v58, %s2875_s16  ;;  %v2369_v18 = vunpack.i.h.bf16 %v2367_v62  ;;  %v2374_v28 = vunpack.i.h.bf16 %v2372_v61  ;;  %v2373_v29 = vunpack.i.l.bf16 %v2372_v61 }
 0x307   : > { %2451 = vrot.lane.b32.xlu1 %v2450_v63, %s2875_s16 }
 0x308   : > { %v1000_v15 = vsel %vm605_vm11, %v2364_v9, %v2368_v6  ;;  %v2505_v31 = vpack.i.bf16 %v2369_v18, %v2363_v10  ;;  %v1001_v40 = vsel %vm605_vm11, %v2369_v18, %v2373_v29  ;;  %v1002_v41 = vsel %vm605_vm11, %v2373_v29, %v2374_v28 }
 0x309   : > { %v3204_v12 = vpop.permute.xlu1 %2386  ;;  %v2377_v13 = vpop.permute.xlu0 %2376  ;;  %v2495_v22 = vpack.i.bf16 %v1000_v15, %v999_v19  ;;  %v2500_v48 = vpack.i.bf16 %v1002_v41, %v1001_v40 }
 0x30a   : > { %2481 = vrot.lane.b32.xlu0 %v2480_v11, %s2875_s16  ;;  %v2379_v30 = vunpack.i.h.bf16 %v2377_v13  ;;  %v2378_v32 = vunpack.i.l.bf16 %v2377_v13  ;;  %v2389_v58 = vunpack.i.h.bf16 %v3204_v12  ;;  %v2388_v60 = vunpack.i.l.bf16 %v3204_v12 }
 0x30b   : > { %2476 = vrot.lane.b32.xlu1 %v2475_v14, %s2875_s16 }
 0x30c   : > { %v1114_v45 = vsel %vm663_vm12, %v2378_v32, %v2379_v30  ;;  %v1118_v7 = vsel %vm663_vm12, %v2388_v60, %v2389_v58 }
 0x30d   : > { %v3212_v23 = vpop.permute.xlu1 %2396  ;;  %v2382_v24 = vpop.permute.xlu0 %2381 }
 0x30e   : > { %2496 = vrot.lane.b32.xlu0 %v2495_v22, %s2875_s16  ;;  %v2384_v33 = vunpack.i.h.bf16 %v2382_v24  ;;  %v2383_v34 = vunpack.i.l.bf16 %v2382_v24  ;;  %v2399_v24 = vunpack.i.h.bf16 %v3212_v23  ;;  %v2398_v28 = vunpack.i.l.bf16 %v3212_v23 }
 0x30f   : > { %2486 = vrot.lane.b32.xlu1 %v2485_v27, %s2875_s16 }
 0x310   : > { %v1113_v43 = vsel %vm663_vm12, %v2383_v34, %v2378_v32 }
 0x311   : > { %v2407_v36 = vpop.permute.xlu1 %2406  ;;  %v2392_v4 = vpop.permute.xlu0 %2391 }
 0x312   : > { %v2409_v38 = vunpack.i.h.bf16 %v2407_v36  ;;  %v2408_v39 = vunpack.i.l.bf16 %v2407_v36  ;;  %2506 = vrot.lane.b32.xlu0 %v2505_v31, %s2875_s16  ;;  %v2394_v15 = vunpack.i.h.bf16 %v2392_v4  ;;  %v2393_v16 = vunpack.i.l.bf16 %v2392_v4 }
 0x313   : > { %2491 = vrot.lane.b32.xlu1 %v2490_v37, %s2875_s16 }
 0x314   : > { %v1115_v44 = vsel %vm663_vm12, %v2384_v33, %v2408_v39  ;;  %v1116_v46 = vsel %vm663_vm12, %v2408_v39, %v2409_v38  ;;  %v1122_v34 = vsel %vm663_vm12, %v2393_v16, %v2394_v15 }
 0x315   : > { %v2056_v47 = vpack.c.bf16 %v1116_v46, %v1114_v45  ;;  %v2058_v49 = vpack.c.bf16 %v1115_v44, %v1113_v43  ;;  %v3246_v5 = vpop.permute.xlu0 %2401  ;;  %v1126_v46 = vsel %vm663_vm12, %v2398_v28, %v2399_v24 }
 0x316   : > { %1309 = vperm.xlu0 %2163, %v1304_v42   ;;  %v2404_v44 = vunpack.i.h.bf16 %v3246_v5  ;;  %v2403_v45 = vunpack.i.l.bf16 %v3246_v5 }
 0x317   : > { %2057 = vmatprep.subr.bf16.mxu1 %v2056_v47  ;;  %2501 = vrot.lane.b32.xlu1 %v2500_v48, %s2875_s16 }
 0x318   : > { %2059 = vmatpush1.bf16.msra.mxu1 %v2058_v49 }
 0x31a   : > { %1289 = vperm.xlu0 %2163, %v1276_v50  }
 0x31b   : > { %1279 = vperm.xlu1 %2259, %v1274_v51  }
 0x31e   : > { %1319 = vperm.xlu0 %2163, %v1306_v52  }
 0x31f   : > { %1284 = vperm.xlu1 %2259, %v1275_v53  }
 0x323   : > { %1314 = vperm.xlu1 %2259, %v1305_v54  }
 0x360   : > { %v3248_v55 = vpop.permute.xlu0 %2411 }
 0x361   : > { %v2417_v56 = vpop.permute.xlu1 %2416  ;;  %v2414_v4 = vunpack.i.h.bf16 %v3248_v55 }
 0x362   : > { %v2418_v61 = vunpack.i.l.bf16 %v2417_v56  ;;  %v2419_v63 = vunpack.i.h.bf16 %v2417_v56  ;;  %v2413_v56 = vunpack.i.l.bf16 %v3248_v55 }
 0x364   : > { %v2422_v62 = vpop.permute.xlu0 %2421  ;;  %v1117_v2 = vsel %vm663_vm12, %v2418_v61, %v2388_v60  ;;  %v1130_v61 = vsel %vm663_vm12, %v2403_v45, %v2404_v44  ;;  %v1129_v55 = vsel %vm663_vm12, %v2413_v56, %v2403_v45 }
 0x365   : > { %v2424_v0 = vunpack.i.h.bf16 %v2422_v62  ;;  %v2423_v1 = vunpack.i.l.bf16 %v2422_v62 }
 0x367   : > { %v1119_v6 = vsel %vm663_vm12, %v2419_v63, %v2423_v1  ;;  %v1120_v8 = vsel %vm663_vm12, %v2423_v1, %v2424_v0 }
 0x368   : > { %v2427_v9 = vpop.permute.xlu0 %2426  ;;  %v2060_v10 = vpack.c.bf16 %v1120_v8, %v1118_v7  ;;  %v2062_v11 = vpack.c.bf16 %v1119_v6, %v1117_v2 }
 0x369   : > { %v2432_v13 = vpop.permute.xlu1 %2431  ;;  %v2428_v17 = vunpack.i.l.bf16 %v2427_v9  ;;  %v2429_v29 = vunpack.i.h.bf16 %v2427_v9 }
 0x36a   : > { %2061 = vmatprep.subr.bf16.mxu1 %v2060_v10  ;;  %v2434_v40 = vunpack.i.h.bf16 %v2432_v13  ;;  %v2433_v41 = vunpack.i.l.bf16 %v2432_v13 }
 0x36b   : > { %2063 = vmatpush1.bf16.msra.mxu1 %v2062_v11  ;;  %v1121_v35 = vsel %vm663_vm12, %v2428_v17, %v2393_v16 }
 0x36c   : > { %v2457_v12 = vpop.permute.xlu0 %2456  ;;  %v1125_v5 = vsel %vm663_vm12, %v2433_v41, %v2398_v28 }
 0x36d   : > { %v2437_v14 = vpop.permute.xlu1 %2436  ;;  %v2459_v18 = vunpack.i.h.bf16 %v2457_v12  ;;  %v2458_v19 = vunpack.i.l.bf16 %v2457_v12 }
 0x36e   : > { %v2439_v32 = vunpack.i.h.bf16 %v2437_v14  ;;  %v2438_v33 = vunpack.i.l.bf16 %v2437_v14 }
 0x36f   : > { %v1128_v39 = vsel %vm663_vm12, %v2458_v19, %v2459_v18  ;;  %v1127_v47 = vsel %vm663_vm12, %v2434_v40, %v2458_v19 }
 0x370   : > { %v3256_v22 = vpop.permute.xlu0 %2461  ;;  %v2068_v48 = vpack.c.bf16 %v1128_v39, %v1126_v46  ;;  %v1132_v49 = vsel %vm663_vm12, %v2438_v33, %v2439_v32  ;;  %v2070_v60 = vpack.c.bf16 %v1127_v47, %v1125_v5  ;;  %v1131_v62 = vsel %vm663_vm12, %v2414_v4, %v2438_v33 }
 0x371   : > { %v2442_v27 = vpop.permute.xlu1 %2441  ;;  %v2072_v1 = vpack.c.bf16 %v1132_v49, %v1130_v61  ;;  %v2464_v9 = vunpack.i.h.bf16 %v3256_v22  ;;  %v2463_v10 = vunpack.i.l.bf16 %v3256_v22  ;;  %v2074_v11 = vpack.c.bf16 %v1131_v62, %v1129_v55  ;;  %v2855_v62 = vld [vmem:[%s2954_s27] sm:$0xff] }
 0x372   : > { %v2444_v30 = vunpack.i.h.bf16 %v2442_v27  ;;  %v2443_v31 = vunpack.i.l.bf16 %v2442_v27 }
 0x373   : > { %v1138_v32 = vsel %vm663_vm12, %v2463_v10, %v2464_v9 }
 0x374   : > { %v1123_v36 = vsel %vm663_vm12, %v2429_v29, %v2443_v31  ;;  %v2467_v37 = vpop.permute.xlu0 %2466  ;;  %v1124_v38 = vsel %vm663_vm12, %v2443_v31, %v2444_v30 }
 0x375   : > { %v2447_v42 = vpop.permute.xlu1 %2446  ;;  %v2064_v23 = vpack.c.bf16 %v1124_v38, %v1122_v34  ;;  %v2066_v43 = vpack.c.bf16 %v1123_v36, %v1121_v35  ;;  %v2469_v50 = vunpack.i.h.bf16 %v2467_v37  ;;  %v2468_v51 = vunpack.i.l.bf16 %v2467_v37 }
 0x376   : > { %v2449_v52 = vunpack.i.h.bf16 %v2447_v42  ;;  %v2448_v53 = vunpack.i.l.bf16 %v2447_v42 }
 0x377   : > { %2065 = vmatprep.subr.bf16.mxu1 %v2064_v23  ;;  %v1136_v7 = vsel %vm663_vm12, %v2468_v51, %v2469_v50 }
 0x378   : > { %v2472_v54 = vpop.permute.xlu0 %2471  ;;  %2067 = vmatpush1.bf16.msra.mxu1 %v2066_v43  ;;  %v1134_v6 = vsel %vm663_vm12, %v2448_v53, %v2449_v52 }
 0x379   : > { %v2452_v58 = vpop.permute.xlu1 %2451  ;;  %2069 = vmatprep.subr.bf16.mxu1 %v2068_v48  ;;  %v2473_v13 = vunpack.i.l.bf16 %v2472_v54  ;;  %v2076_v15 = vpack.c.bf16 %v1136_v7, %v1134_v6  ;;  %v2474_v28 = vunpack.i.h.bf16 %v2472_v54 }
 0x37a   : > { %v2454_v63 = vunpack.i.h.bf16 %v2452_v58  ;;  %v2453_v0 = vunpack.i.l.bf16 %v2452_v58 }
 0x37b   : > { %v1137_v22 = vsel %vm663_vm12, %v2473_v13, %v2463_v10 }
 0x37c   : > { %v2482_v2 = vpop.permute.xlu0 %2481  ;;  %2071 = vmatpush1.bf16.msra.mxu1 %v2070_v60  ;;  %v1135_v12 = vsel %vm663_vm12, %v2454_v63, %v2468_v51  ;;  %v1133_v14 = vsel %vm663_vm12, %v2453_v0, %v2448_v53  ;;  %v1003_v60 = vld [vmem:[%s3738_s6] sm:$0xff]  ;;  %v2856_v0 = vld [vmem:[%s2954_s27 + $0x8] sm:$0xff] }
 0x37d   : > { %v2477_v8 = vpop.permute.xlu1 %2476  ;;  %2073 = vmatprep.subr.bf16.mxu1 %v2072_v1  ;;  %v2484_v16 = vunpack.i.h.bf16 %v2482_v2  ;;  %v2483_v17 = vunpack.i.l.bf16 %v2482_v2  ;;  %v2078_v29 = vpack.c.bf16 %v1135_v12, %v1133_v14 }
 0x37e   : > { %v2479_v18 = vunpack.i.h.bf16 %v2477_v8  ;;  %v2478_v19 = vunpack.i.l.bf16 %v2477_v8 }
 0x37f   : > { %v1144_v36 = vsel %vm663_vm12, %v2483_v17, %v2484_v16 }
 0x380   : > { %v2497_v24 = vpop.permute.xlu0 %2496  ;;  %2075 = vmatpush1.bf16.msra.mxu1 %v2074_v11  ;;  %v1142_v35 = vsel %vm663_vm12, %v2478_v19, %v2479_v18 }
 0x381   : > { %v2487_v27 = vpop.permute.xlu1 %2486  ;;  %2077 = vmatprep.subr.bf16.mxu1 %v2076_v15  ;;  %v2499_v23 = vunpack.i.h.bf16 %v2497_v24  ;;  %v2084_v43 = vpack.c.bf16 %v1144_v36, %v1142_v35  ;;  %v2498_v44 = vunpack.i.l.bf16 %v2497_v24 }
 0x382   : > { %v2489_v30 = vunpack.i.h.bf16 %v2487_v27  ;;  %v2488_v31 = vunpack.i.l.bf16 %v2487_v27 }
 0x383   : > { %v1146_v4 = vsel %vm663_vm12, %v2498_v44, %v2499_v23 }
 0x384   : > { %v1139_v33 = vsel %vm663_vm12, %v2474_v28, %v2488_v31  ;;  %2079 = vmatpush1.bf16.msra.mxu1 %v2078_v29  ;;  %v1140_v34 = vsel %vm663_vm12, %v2488_v31, %v2489_v30  ;;  %v2507_v38 = vpop.permute.xlu0 %2506 }
 0x385   : > { %v2082_v37 = vpack.c.bf16 %v1139_v33, %v1137_v22  ;;  %v2492_v39 = vpop.permute.xlu1 %2491  ;;  %v2080_v40 = vpack.c.bf16 %v1140_v34, %v1138_v32  ;;  %v2508_v45 = vunpack.i.l.bf16 %v2507_v38  ;;  %v2509_v50 = vunpack.i.h.bf16 %v2507_v38 }
 0x386   : > { %v2494_v41 = vunpack.i.h.bf16 %v2492_v39  ;;  %v2493_v42 = vunpack.i.l.bf16 %v2492_v39 }
 0x387   : > { %2081 = vmatprep.subr.bf16.mxu1 %v2080_v40  ;;  %v1145_v53 = vsel %vm663_vm12, %v2508_v45, %v2498_v44 }
 0x388   : > { %v1143_v46 = vsel %vm663_vm12, %v2494_v41, %v2483_v17  ;;  %v1141_v47 = vsel %vm663_vm12, %v2493_v42, %v2478_v19  ;;  %2083 = vmatpush1.bf16.msra.mxu1 %v2082_v37 }
 0x389   : > { %v2086_v48 = vpack.c.bf16 %v1143_v46, %v1141_v47  ;;  %v2502_v49 = vpop.permute.xlu1 %2501  ;;  %2085 = vmatprep.subr.bf16.mxu1 %v2084_v43 }
 0x38a   : > { %v2504_v51 = vunpack.i.h.bf16 %v2502_v49  ;;  %v2503_v52 = vunpack.i.l.bf16 %v2502_v49 }
 0x38c   : > { %v1147_v54 = vsel %vm663_vm12, %v2509_v50, %v2503_v52  ;;  %2087 = vmatpush1.bf16.msra.mxu1 %v2086_v48  ;;  %v1148_v56 = vsel %vm663_vm12, %v2503_v52, %v2504_v51 }
 0x38d   : > { %v2090_v5 = vpack.c.bf16 %v1147_v54, %v1145_v53  ;;  %v2088_v58 = vpack.c.bf16 %v1148_v56, %v1146_v4 }
 0x38f   : > { %2089 = vmatprep.subr.bf16.mxu1 %v2088_v58 }
 0x390   : > { %2091 = vmatpush1.bf16.msra.mxu1 %v2090_v5 }
 0x393   : > { %1254 = vmatmul.mubr.f32.vlgmr.msra.gmra.mrb[2].mxu1 %v1003_v60 }
 0x395   : > { %v1310_v2 = vpop.permute.xlu0 %1309 }
 0x399   : > { %v1290_v45 = vpop.permute.xlu0 %1289 }
 0x39a   : > { %v1280_v61 = vpop.permute.xlu1 %1279 }
 0x39b   : > { %v1293_v63 = vmul.f32 %v2855_v62, %v1280_v61  ;;  %v1294_v1 = vmul.f32 %v2856_v0, %v1280_v61 }
 0x39d   : > { %v1323_v6 = vadd.f32 %v1310_v2, %v1293_v63  ;;  %v1324_v7 = vadd.f32 %v1310_v2, %v1294_v1  ;;  %v1320_v49 = vpop.permute.xlu0 %1319 }
 0x39e   : > { %v1285_v55 = vpop.permute.xlu1 %1284 }
 0x39f   : > { %v1335_v8 = vmax.f32 %v1323_v6, 0.0  ;;  %v1336_v9 = vmax.f32 %v1324_v7, 0.0  ;;  %v1297_v10 = vmul.f32 %v1285_v55, %v3095_v57  ;;  %v1298_v11 = vmul.f32 %v1285_v55, %v3100_v59 }
 0x3a1   : > { %v2510_v13 = vpack.i.bf16 %v1336_v9, %v1335_v8  ;;  %v1359_v12 = vsel %vm2986_vm2, %v1335_v8, 0.0  ;;  %v1360_v15 = vsel %vm2990_vm3, %v1336_v9, 0.0  ;;  %v1371_v29 = vsel %vm2972_vm0, %v1335_v8, 0.0 }
 0x3a2   : > { %v1315_v14 = vpop.permute.xlu1 %1314  ;;  %v3306_v18 = vpack.i.bf16 %v1360_v15, %v1359_v12  ;;  %v1372_v30 = vsel %vm2976_vm1, %v1336_v9, 0.0 }
 0x3a3   : > { %v1327_v16 = vadd.f32 %v1315_v14, %v1297_v10  ;;  %v1328_v17 = vadd.f32 %v1315_v14, %v1298_v11  ;;  %2511 = vrot.lane.b32.xlu1 %v2510_v13, %s2867_s21  ;;  %v2520_v31 = vpack.i.bf16 %v1372_v30, %v1371_v29 }
 0x3a5   : > { %v1339_v19 = vmax.f32 %v1327_v16, 0.0  ;;  %v3308_v24 = vmax.f32 %v1328_v17, 0.0 }
 0x3a7   : > { %1403 = vrot.lane.b32.xlu1 %v2866_v3, %s2867_s21  ;;  %v2515_v57 = vpack.i.bf16 %v1339_v19, %v2866_v3  ;;  %v1375_v59 = vsel %vm2972_vm0, %v1339_v19, 0.0  ;;  %v1376_v27 = vsel %vm2976_vm1, %v3308_v24, 0.0  ;;  %v3333_v22 = vsel %vm2986_vm2, %v1339_v19, 0.0 }
 0x3a8   : > { %v2525_v28 = vpack.i.bf16 %v1376_v27, %v1375_v59  ;;  %v2550_v32 = vpack.i.bf16 %v3308_v24, %v1339_v19  ;;  %v2540_v33 = vpack.i.bf16 %v3333_v22, %v2866_v3  ;;  %v2565_v34 = vpack.i.bf16 %v2866_v3, %v1376_v27 }
 0x3a9   : > { %2516 = vrot.lane.b32.xlu0 %v2515_v57, %s2867_s21  ;;  %v2560_v35 = vpack.i.bf16 %v1375_v59, %v2866_v3  ;;  %v1364_v36 = vsel %vm2990_vm3, %v3308_v24, 0.0  ;;  %v2595_v38 = vpack.i.bf16 %v2866_v3, %v3308_v24 }
 0x3aa   : > { %v2580_v37 = vpack.i.bf16 %v2866_v3, %v1364_v36  ;;  %v2655_v6 = vpack.i.bf16 %v1364_v36, %v3333_v22 }
 0x3ab   : > { %2526 = vrot.lane.b32.xlu1 %v2525_v28, %s2869_s29 }
 0x3ad   : > { %2521 = vrot.lane.b32.xlu0 %v2520_v31, %s2869_s29 }
 0x3af   : > { %1436 = vrot.lane.b32.xlu1 %v2866_v3, %s2869_s29 }
 0x3b1   : > { %2531 = vrot.lane.b32.xlu0 %v2866_v3, %s2869_s29 }
 0x3b3   : > { %1469 = vrot.lane.b32.xlu1 %v2866_v3, %s2868_s28 }
 0x3b5   : > { %2536 = vrot.lane.b32.xlu0 %v3306_v18, %s2868_s28 }
 0x3b7   : > { %2551 = vrot.lane.b32.xlu1 %v2550_v32, %s2871_s11 }
 0x3b9   : > { %2541 = vrot.lane.b32.xlu0 %v2540_v33, %s2868_s28 }
 0x3bb   : > { %2556 = vrot.lane.b32.xlu1 %v2520_v31, %s2870_s30 }
 0x3bd   : > { %2546 = vrot.lane.b32.xlu0 %v2510_v13, %s2871_s11 }
 0x3bf   : > { %2566 = vrot.lane.b32.xlu1 %v2565_v34, %s2870_s30 }
 0x3c1   : > { %2561 = vrot.lane.b32.xlu0 %v2560_v35, %s2870_s30 }
 0x3c3   : > { %1515 = vrot.lane.b32.xlu1 %v2866_v3, %s2870_s30 }
 0x3c5   : > { %2571 = vrot.lane.b32.xlu0 %v3306_v18, %s2873_s14 }
 0x3c7   : > { %2576 = vrot.lane.b32.xlu1 %v2540_v33, %s2873_s14 }
 0x3c9   : > { %2581 = vrot.lane.b32.xlu0 %v2580_v37, %s2873_s14 }
 0x3cb   : > { %2586 = vrot.lane.b32.xlu1 %v2510_v13, %s2872_s12 }
 0x3cd   : > { %1542 = vrot.lane.b32.xlu0 %v2866_v3, %s2873_s14 }
 0x3cf   : > { %2596 = vrot.lane.b32.xlu1 %v2595_v38, %s2872_s12 }
 0x3d1   : > { %2591 = vrot.lane.b32.xlu0 %v2515_v57, %s2872_s12 }
 0x3d3   : > { %1569 = vrot.lane.b32.xlu1 %v2866_v3, %s2872_s12 }
 0x3d5   : > { %2601 = vrot.lane.b32.xlu0 %v2520_v31, %s2874_s15 }
 0x415   : > { %v2512_v39 = vpop.permute.xlu1 %2511 }
 0x416   : > { %v2513_v2 = vunpack.i.l.bf16 %v2512_v39  ;;  %v2514_v55 = vunpack.i.h.bf16 %v2512_v39 }
 0x418   : > { %v1410_v13 = vsel %vm536_vm4, %v2513_v2, %v2514_v55 }
 0x419   : > { %v3368_v40 = vpop.permute.xlu1 %1403  ;;  %v2670_v12 = vpack.i.bf16 %v2514_v55, %v1410_v13 }
 0x41b   : > { %v3404_v20 = vpop.permute.xlu0 %2516 }
 0x41c   : > { %v2518_v26 = vunpack.i.l.bf16 %v3404_v20 }
 0x41d   : > { %v3370_v41 = vpop.permute.xlu1 %2526 }
 0x41e   : > { %v2529_v42 = vunpack.i.h.bf16 %v3370_v41  ;;  %v2528_v23 = vunpack.i.l.bf16 %v3370_v41  ;;  %v1409_v7 = vsel %vm536_vm4, %v2518_v26, %v2513_v2 }
 0x41f   : > { %v2522_v1 = vpop.permute.xlu0 %2521  ;;  %v2675_v8 = vpack.i.bf16 %v1409_v7, %v2866_v3 }
 0x420   : > { %v1445_v43 = vsel %vm548_vm6, %v2528_v23, %v2529_v42  ;;  %v2524_v10 = vunpack.i.h.bf16 %v2522_v1  ;;  %v2523_v11 = vunpack.i.l.bf16 %v2522_v1 }
 0x421   : > { %v3377_v44 = vpack.i.bf16 %v2529_v42, %v1445_v43  ;;  %v3441_v29 = vpop.permute.xlu1 %1436 }
 0x422   : > { %v1443_v14 = vsel %vm548_vm6, %v2523_v11, %v2524_v10 }
 0x423   : > { %v2532_v9 = vpop.permute.xlu0 %2531 }
 0x424   : > { %v2534_v15 = vunpack.i.h.bf16 %v2532_v9  ;;  %v2533_v16 = vunpack.i.l.bf16 %v2532_v9 }
 0x425   : > { %v3443_v30 = vpop.permute.xlu1 %1469 }
 0x426   : > { %v1444_v19 = vsel %vm548_vm6, %v2534_v15, %v2528_v23 }
 0x427   : > { %v3424_v17 = vpop.permute.xlu0 %2536 }
 0x428   : > { %v2538_v57 = vunpack.i.l.bf16 %v3424_v17 }
 0x429   : > { %v2552_v31 = vpop.permute.xlu1 %2551 }
 0x42b   : > { %v3445_v22 = vpop.permute.xlu0 %2541 }
 0x42d   : > { %v3447_v32 = vpop.permute.xlu1 %2556 }
 0x42f   : > { %v2547_v33 = vpop.permute.xlu0 %2546 }
 0x466   : > { %v1255_v46 = vpop.f32.mrb[2].mxu1 }
 0x467   : > { %v1301_v47 = vmul.f32 %v1290_v45, %v1255_v46  ;;  %1962 = vst [vmem:[%s2954_s27 + $0x20] sm:$0xff] %v1255_v46  ;;  %v1257_v48 = vpop.f32.mrb[3].mxu1 }
 0x468   : > { %v1302_v50 = vmul.f32 %v1290_v45, %v1257_v48  ;;  %1963 = vst [vmem:[%s2954_s27 + $0x28] sm:$0xff] %v1257_v48  ;;  %v2519_v48 = vunpack.i.h.bf16 %v3404_v20 }
 0x469   : > { %v1331_v51 = vadd.f32 %v1320_v49, %v1301_v47 }
 0x46a   : > { %v1332_v52 = vadd.f32 %v1320_v49, %v1302_v50 }
 0x46b   : > { %v1343_v53 = vmax.f32 %v1331_v51, 0.0 }
 0x46c   : > { %v1344_v54 = vmax.f32 %v1332_v52, 0.0  ;;  %v2554_v52 = vunpack.i.h.bf16 %v2552_v31 }
 0x46d   : > { %v2605_v4 = vpack.i.bf16 %v1343_v53, %v3308_v24  ;;  %v1367_v56 = vsel %vm2986_vm2, %v1343_v53, 0.0  ;;  %v1379_v63 = vsel %vm2972_vm0, %v1343_v53, 0.0  ;;  %v2539_v24 = vunpack.i.h.bf16 %v3424_v17 }
 0x46e   : > { %v2610_v5 = vpack.i.bf16 %v2866_v3, %v1344_v54  ;;  %v2620_v58 = vpack.i.bf16 %v1344_v54, %v1343_v53  ;;  %v1368_v60 = vsel %vm2990_vm3, %v1344_v54, 0.0  ;;  %v2615_v62 = vpack.i.bf16 %v1367_v56, %v1364_v36 }
 0x46f   : > { %2606 = vrot.lane.b32.xlu1 %v2605_v4, %s2867_s21  ;;  %v3389_v61 = vpack.i.bf16 %v1368_v60, %v1367_v56  ;;  %v3395_v25 = vsel %vm2976_vm1, %v1344_v54, 0.0  ;;  %v2645_v21 = vpack.i.bf16 %v2866_v3, %v1368_v60  ;;  %v1476_v27 = vsel %vm560_vm7, %v2538_v57, %v2539_v24 }
 0x470   : > { %2611 = vrot.lane.b32.xlu0 %v2610_v5, %s2867_s21  ;;  %v2630_v0 = vpack.i.bf16 %v3395_v25, %v1379_v63  ;;  %v2705_v28 = vpack.i.bf16 %v2539_v24, %v1476_v27  ;;  %v2553_v53 = vunpack.i.l.bf16 %v2552_v31  ;;  %v2544_v56 = vunpack.i.h.bf16 %v3445_v22 }
 0x471   : > { %v2549_v5 = vunpack.i.h.bf16 %v2547_v33 }
 0x473   : > { %2616 = vrot.lane.b32.xlu1 %v2615_v62, %s2868_s28 }
 0x474   : > { %2621 = vrot.lane.b32.xlu0 %v2620_v58, %s2871_s11 }
 0x477   : > { %2631 = vrot.lane.b32.xlu1 %v2630_v0, %s2869_s29 }
 0x478   : > { %2626 = vrot.lane.b32.xlu0 %v2620_v58, %s2872_s12  ;;  %v2548_v58 = vunpack.i.l.bf16 %v2547_v33 }
 0x47a   : > { %v1493_v26 = vsel %vm567_vm5, %v2548_v58, %v2549_v5  ;;  %v2725_v15 = vpack.i.bf16 %v2553_v53, %v2548_v58 }
 0x47b   : > { %2636 = vrot.lane.b32.xlu1 %v2560_v35, %s2874_s15  ;;  %v3451_v35 = vpop.permute.xlu0 %2561 }
 0x47c   : > { %2641 = vrot.lane.b32.xlu0 %v2565_v34, %s2874_s15  ;;  %v3449_v34 = vpop.permute.xlu1 %2566 }
 0x47f   : > { %1589 = vrot.lane.b32.xlu1 %v1379_v63, %s2874_s15  ;;  %v3455_v37 = vpop.permute.xlu0 %2571 }
 0x480   : > { %2646 = vrot.lane.b32.xlu0 %v2645_v21, %s2868_s28  ;;  %v3453_v36 = vpop.permute.xlu1 %1515  ;;  %v1494_v21 = vsel %vm567_vm5, %v2553_v53, %v2554_v52 }
 0x481   : > { %v2720_v2 = vpack.i.bf16 %v2554_v52, %v1494_v21 }
 0x483   : > { %1593 = vrot.lane.b32.xlu1 %v2866_v3, %s2874_s15  ;;  %v3459_v39 = vpop.permute.xlu0 %2581 }
 0x484   : > { %2651 = vrot.lane.b32.xlu0 %v3306_v18, %s2875_s16  ;;  %v1442_v18 = vsel %vm548_vm6, %v2533_v16, %v2523_v11  ;;  %v3457_v38 = vpop.permute.xlu1 %2576 }
 0x485   : > { %v2700_v59 = vpack.i.bf16 %v1444_v19, %v1442_v18 }
 0x487   : > { %2656 = vrot.lane.b32.xlu1 %v2655_v6, %s2875_s16  ;;  %v3463_v42 = vpop.permute.xlu0 %1542  ;;  %v2715_v6 = vpack.i.bf16 %v2549_v5, %v1493_v26 }
 0x488   : > { %2661 = vrot.lane.b32.xlu0 %v2866_v3, %s2875_s16  ;;  %v2690_v3 = vpack.i.bf16 %v2524_v10, %v1443_v14  ;;  %v3461_v41 = vpop.permute.xlu1 %2586  ;;  %v2563_v10 = vunpack.i.l.bf16 %v3451_v35  ;;  %v2558_v14 = vunpack.i.l.bf16 %v3447_v32 }
 0x48b   : > { %2676 = vrot.lane.b32.xlu1 %v2675_v8, %s2875_s16  ;;  %v3467_v43 = vpop.permute.xlu0 %2591 }
 0x48c   : > { %2666 = vrot.lane.b32.xlu0 %v2630_v0, %s2870_s30  ;;  %v3465_v23 = vpop.permute.xlu1 %2596 }
 0x48f   : > { %2686 = vrot.lane.b32.xlu1 %v3389_v61, %s2873_s14  ;;  %v3471_v46 = vpop.permute.xlu0 %2601 }
 0x490   : > { %2671 = vrot.lane.b32.xlu0 %v2670_v12, %s2875_s16  ;;  %v3469_v45 = vpop.permute.xlu1 %1569 }
 0x493   : > { %2691 = vrot.lane.b32.xlu1 %v2690_v3, %s2875_s16 }
 0x497   : > { %2701 = vrot.lane.b32.xlu1 %v2700_v59, %s2875_s16 }
 0x49b   : > { %2706 = vrot.lane.b32.xlu1 %v2705_v28, %s2875_s16 }
 0x4e1   : > { %v2607_v47 = vpop.permute.xlu1 %2606 }
 0x4e2   : > { %v2608_v49 = vunpack.i.l.bf16 %v2607_v47  ;;  %v2612_v50 = vpop.permute.xlu0 %2611  ;;  %v2609_v55 = vunpack.i.h.bf16 %v2607_v47 }
 0x4e3   : > { %v2613_v8 = vunpack.i.l.bf16 %v2612_v50  ;;  %v2614_v3 = vunpack.i.h.bf16 %v2612_v50 }
 0x4e4   : > { %v1412_v51 = vsel %vm536_vm4, %v2519_v48, %v2608_v49 }
 0x4e5   : > { %v2680_v54 = vpack.i.bf16 %v2608_v49, %v1412_v51  ;;  %v3475_v4 = vpop.permute.xlu1 %2616  ;;  %v1414_v13 = vsel %vm536_vm4, %v2609_v55, %v2613_v8  ;;  %v1411_v33 = vsel %vm536_vm4, %v2614_v3, %v2519_v48 }
 0x4e6   : > { %v2618_v60 = vunpack.i.l.bf16 %v3475_v4  ;;  %v3479_v62 = vpop.permute.xlu0 %2621  ;;  %v2745_v18 = vpack.i.bf16 %v2613_v8, %v1414_v13  ;;  %v2619_v47 = vunpack.i.h.bf16 %v3475_v4  ;;  %v2578_v8 = vunpack.i.l.bf16 %v3457_v38 }
 0x4e7   : > { %2681 = vrot.lane.b32.xlu0 %v2680_v54, %s2875_s16  ;;  %v2623_v19 = vunpack.i.l.bf16 %v3479_v62  ;;  %v2624_v5 = vunpack.i.h.bf16 %v3479_v62 }
 0x4e8   : > { %v1478_v63 = vsel %vm560_vm7, %v2544_v56, %v2618_v60  ;;  %v1479_v21 = vsel %vm560_vm7, %v3443_v30, %v2619_v47 }
 0x4e9   : > { %v2710_v0 = vpack.i.bf16 %v2618_v60, %v1478_v63  ;;  %v3483_v20 = vpop.permute.xlu1 %2631  ;;  %v2750_v49 = vpack.i.bf16 %v2558_v14, %v2623_v19 }
 0x4ea   : > { %v3487_v1 = vpop.permute.xlu0 %2626  ;;  %v2633_v51 = vunpack.i.l.bf16 %v3483_v20 }
 0x4eb   : > { %2711 = vrot.lane.b32.xlu1 %v2710_v0, %s2875_s16  ;;  %2696 = vrot.lane.b32.xlu0 %v3377_v44, %s2875_s16  ;;  %v2559_v44 = vunpack.i.h.bf16 %v3447_v32  ;;  %v1413_v32 = vsel %vm536_vm4, %v3368_v40, %v2609_v55  ;;  %v2543_v40 = vunpack.i.l.bf16 %v3445_v22 }
 0x4ec   : > { %v2740_v48 = vpack.i.bf16 %v1413_v32, %v1411_v33 }
 0x4ed   : > { %v3492_v7 = vpop.permute.xlu1 %2636  ;;  %v1518_v16 = vsel %vm576_vm8, %v2559_v44, %v2563_v10  ;;  %v1517_v27 = vsel %vm576_vm8, %v2558_v14, %v2559_v44  ;;  %v1495_v10 = vsel %vm567_vm5, %v2623_v19, %v2624_v5  ;;  %v1475_v30 = vsel %vm560_vm7, %v2543_v40, %v2538_v57 }
 0x4ee   : > { %v3494_v9 = vpop.permute.xlu0 %2641  ;;  %v2765_v44 = vpack.i.bf16 %v2624_v5, %v1495_v10 }
 0x4ef   : > { %2721 = vrot.lane.b32.xlu1 %v2720_v2, %s2875_s16  ;;  %2716 = vrot.lane.b32.xlu0 %v2715_v6, %s2875_s16  ;;  %v2634_v2 = vunpack.i.h.bf16 %v3483_v20  ;;  %v1446_v6 = vsel %vm548_vm6, %v3441_v29, %v2633_v51  ;;  %v2574_v20 = vunpack.i.h.bf16 %v3455_v37  ;;  %v2573_v29 = vunpack.i.l.bf16 %v3455_v37 }
 0x4f0   : > { %v2755_v13 = vpack.i.bf16 %v1475_v30, %v1446_v6  ;;  %v2579_v37 = vunpack.i.h.bf16 %v3457_v38  ;;  %v2644_v6 = vunpack.i.h.bf16 %v3494_v9 }
 0x4f1   : > { %v3499_v11 = vpop.permute.xlu1 %1589  ;;  %v1447_v14 = vsel %vm548_vm6, %v2633_v51, %v2634_v2  ;;  %v1544_v57 = vsel %vm586_vm10, %v2573_v29, %v2574_v20  ;;  %v2588_v51 = vunpack.i.l.bf16 %v3461_v41 }
 0x4f2   : > { %v3502_v12 = vpop.permute.xlu0 %2646  ;;  %v2770_v3 = vpack.i.bf16 %v2634_v2, %v1447_v14  ;;  %v2800_v32 = vpack.i.bf16 %v2579_v37, %v2573_v29  ;;  %v2639_v2 = vunpack.i.h.bf16 %v3492_v7  ;;  %v2638_v14 = vunpack.i.l.bf16 %v3492_v7 }
 0x4f3   : > { %2736 = vrot.lane.b32.xlu1 %v3389_v61, %s2875_s16  ;;  %1591 = vrot.lane.b32.xlu0 %v3395_v25, %s2874_s15  ;;  %v2649_v28 = vunpack.i.h.bf16 %v3502_v12  ;;  %v2730_v61 = vpack.i.bf16 %v1518_v16, %v1517_v27  ;;  %v1545_v16 = vsel %vm586_vm10, %v2574_v20, %v2578_v8  ;;  %v2629_v8 = vunpack.i.h.bf16 %v3487_v1 }
 0x4f4   : > { %v2790_v19 = vpack.i.bf16 %v1545_v16, %v1544_v57  ;;  %v2603_v16 = vunpack.i.l.bf16 %v3471_v46 }
 0x4f5   : > { %v3512_v24 = vpop.permute.xlu1 %1593  ;;  %v1477_v58 = vsel %vm560_vm7, %v2649_v28, %v2544_v56 }
 0x4f6   : > { %v2652_v59 = vpop.permute.xlu0 %2651  ;;  %v2760_v55 = vpack.i.bf16 %v1479_v21, %v1477_v58  ;;  %v2850_v7 = vpack.i.bf16 %v2639_v2, %v2603_v16 }
 0x4f7   : > { %2746 = vrot.lane.b32.xlu1 %v2745_v18, %s2875_s16  ;;  %2726 = vrot.lane.b32.xlu0 %v2725_v15, %s2875_s16  ;;  %v2654_v25 = vunpack.i.h.bf16 %v2652_v59  ;;  %v2653_v31 = vunpack.i.l.bf16 %v2652_v59  ;;  %v2648_v15 = vunpack.i.l.bf16 %v3502_v12  ;;  %v2564_v18 = vunpack.i.h.bf16 %v3451_v35 }
 0x4f8   : > { %v2569_v12 = vunpack.i.h.bf16 %v3449_v34  ;;  %v2593_v35 = vunpack.i.l.bf16 %v3467_v43 }
 0x4f9   : > { %v2657_v50 = vpop.permute.xlu1 %2656  ;;  %v1766_v4 = vsel %vm663_vm12, %v2653_v31, %v2654_v25  ;;  %v1480_v59 = vsel %vm560_vm7, %v2619_v47, %v2648_v15 }
 0x4fa   : > { %v2659_v52 = vunpack.i.h.bf16 %v2657_v50  ;;  %v2658_v53 = vunpack.i.l.bf16 %v2657_v50  ;;  %v2662_v54 = vpop.permute.xlu0 %2661  ;;  %v2775_v25 = vpack.i.bf16 %v2648_v15, %v1480_v59  ;;  %v2589_v50 = vunpack.i.h.bf16 %v3461_v41 }
 0x4fb   : > { %v2664_v60 = vunpack.i.h.bf16 %v2662_v54  ;;  %v2663_v63 = vunpack.i.l.bf16 %v2662_v54  ;;  %2751 = vrot.lane.b32.xlu1 %v2750_v49, %s2875_s16  ;;  %2731 = vrot.lane.b32.xlu0 %v2730_v61, %s2875_s16  ;;  %v2568_v61 = vunpack.i.l.bf16 %v3449_v34  ;;  %v2594_v54 = vunpack.i.h.bf16 %v3467_v43 }
 0x4fc   : > { %v1768_v0 = vsel %vm663_vm12, %v2658_v53, %v2659_v52  ;;  %v2584_v52 = vunpack.i.h.bf16 %v3459_v39  ;;  %v1572_v5 = vsel %vm596_vm9, %v2589_v50, %v2593_v35  ;;  %v1571_v58 = vsel %vm596_vm9, %v2588_v51, %v2589_v50 }
 0x4fd   : > { %v2092_v26 = vpack.c.bf16 %v1768_v0, %v1766_v4  ;;  %v1765_v62 = vsel %vm663_vm12, %v2663_v63, %v2653_v31  ;;  %v1767_v56 = vsel %vm663_vm12, %v2664_v60, %v2658_v53  ;;  %v1519_v31 = vsel %vm576_vm8, %v2564_v18, %v2568_v61  ;;  %v3566_v49 = vpop.permute.xlu1 %2676 }
 0x4fe   : > { %v2094_v22 = vpack.c.bf16 %v1767_v56, %v1765_v62  ;;  %v2667_v17 = vpop.permute.xlu0 %2666  ;;  %v1520_v47 = vsel %vm576_vm8, %v2568_v61, %v2569_v12  ;;  %v2583_v53 = vunpack.i.l.bf16 %v3459_v39  ;;  %v2599_v60 = vunpack.i.h.bf16 %v3465_v23  ;;  %v1602_v12 = vld [vmem:[%s3741_s9 + $0x8] sm:$0xff] }
 0x4ff   : > { %2741 = vrot.lane.b32.xlu0 %v2740_v48, %s2875_s16  ;;  %2093 = vmatprep.subr.bf16.mxu0 %v2092_v26  ;;  %v2669_v27 = vunpack.i.h.bf16 %v2667_v17  ;;  %v2668_v28 = vunpack.i.l.bf16 %v2667_v17  ;;  %v2780_v34 = vpack.i.bf16 %v1520_v47, %v1519_v31  ;;  %v2598_v63 = vunpack.i.l.bf16 %v3465_v23 }
 0x500   : > { %2761 = vrot.lane.b32.xlu1 %v2760_v55, %s2875_s16  ;;  %2095 = vmatpush1.bf16.msra.mxu0 %v2094_v22  ;;  %v1546_v40 = vsel %vm586_vm10, %v2579_v37, %v2583_v53  ;;  %v1547_v39 = vsel %vm586_vm10, %v2583_v53, %v2584_v52  ;;  %v2810_v48 = vpack.i.bf16 %v1572_v5, %v1571_v58  ;;  %v2628_v23 = vunpack.i.l.bf16 %v3487_v1 }
 0x501   : > { %v1522_v38 = vsel %vm576_vm8, %v2669_v27, %v3453_v36  ;;  %v1521_v33 = vsel %vm576_vm8, %v2668_v28, %v2669_v27  ;;  %v2785_v41 = vpack.i.bf16 %v2668_v28, %v2564_v18  ;;  %v2687_v4 = vpop.permute.xlu1 %2686  ;;  %v1573_v43 = vsel %vm596_vm9, %v2594_v54, %v2598_v63  ;;  %2035 = vmatprep.mubr.msk.f32.mxu0 %vm1873_vm15, %v1602_v12 }
 0x502   : > { %v2805_v36 = vpack.i.bf16 %v1522_v38, %v1521_v33  ;;  %v2795_v0 = vpack.i.bf16 %v1547_v39, %v1546_v40  ;;  %v1574_v21 = vsel %vm596_vm9, %v2598_v63, %v2599_v60  ;;  %v2688_v26 = vunpack.i.l.bf16 %v2687_v4 }
 0x503   : > { %2756 = vrot.lane.b32.xlu0 %v2755_v13, %s2875_s16  ;;  %v2820_v62 = vpack.i.bf16 %v1574_v21, %v1573_v43  ;;  %v2689_v56 = vunpack.i.h.bf16 %v2687_v4  ;;  %v2643_v55 = vunpack.i.l.bf16 %v3494_v9  ;;  %v2835_v10 = vpack.i.bf16 %v2628_v23, %v2594_v54 }
 0x504   : > { %2766 = vrot.lane.b32.xlu1 %v2765_v44, %s2875_s16  ;;  %v2815_v22 = vpack.i.bf16 %v2588_v51, %v2688_v26  ;;  %v1576_v44 = vsel %vm596_vm9, %v2629_v8, %v3469_v45  ;;  %v1575_v1 = vsel %vm596_vm9, %v2628_v23, %v2629_v8  ;;  %v2679_v35 = vunpack.i.h.bf16 %v3566_v49 }
 0x505   : > { %v1549_v30 = vsel %vm586_vm10, %v2689_v56, %v3463_v42  ;;  %v1548_v20 = vsel %vm586_vm10, %v2688_v26, %v2689_v56  ;;  %v1597_v29 = vsel %vm605_vm11, %v2639_v2, %v2643_v55  ;;  %v1598_v13 = vsel %vm605_vm11, %v2643_v55, %v2644_v6  ;;  %v3613_v18 = vpop.permute.xlu1 %2691 }
 0x506   : > { %v2825_v9 = vpack.i.bf16 %v1549_v30, %v1548_v20  ;;  %v2845_v15 = vpack.i.bf16 %v1598_v13, %v1597_v29  ;;  %v2604_v42 = vunpack.i.h.bf16 %v3471_v46  ;;  %v2830_v17 = vpack.i.bf16 %v1576_v44, %v1575_v1  ;;  %v2672_v46 = vpop.permute.xlu0 %2671 }
 0x507   : > { %2771 = vrot.lane.b32.xlu0 %v2770_v3, %s2875_s16  ;;  %v2674_v31 = vunpack.i.h.bf16 %v2672_v46  ;;  %v2678_v38 = vunpack.i.l.bf16 %v3566_v49  ;;  %v2694_v23 = vunpack.i.h.bf16 %v3613_v18  ;;  %v2693_v56 = vunpack.i.l.bf16 %v3613_v18 }
 0x508   : > { %2791 = vrot.lane.b32.xlu1 %v2790_v19, %s2875_s16  ;;  %v1596_v57 = vsel %vm605_vm11, %v2604_v42, %v2638_v14  ;;  %v1595_v45 = vsel %vm605_vm11, %v2603_v16, %v2604_v42 }
 0x509   : > { %v2840_v3 = vpack.i.bf16 %v1596_v57, %v1595_v45  ;;  %v3615_v37 = vpop.permute.xlu1 %2701 }
 0x50a   : > { %v2704_v8 = vunpack.i.h.bf16 %v3615_v37 }
 0x50b   : > { %2776 = vrot.lane.b32.xlu0 %v2775_v25, %s2875_s16 }
 0x50c   : > { %2801 = vrot.lane.b32.xlu1 %v2800_v32, %s2875_s16  ;;  %v2673_v32 = vunpack.i.l.bf16 %v2672_v46 }
 0x50d   : > { %v3617_v19 = vpop.permute.xlu1 %2706 }
 0x50e   : > { %v1772_v53 = vsel %vm663_vm12, %v2673_v32, %v2674_v31  ;;  %v2709_v44 = vunpack.i.h.bf16 %v3617_v19  ;;  %v2708_v1 = vunpack.i.l.bf16 %v3617_v19 }
 0x50f   : > { %2781 = vrot.lane.b32.xlu0 %v2780_v34, %s2875_s16 }
 0x510   : > { %2806 = vrot.lane.b32.xlu1 %v2805_v36, %s2875_s16  ;;  %v1771_v36 = vsel %vm663_vm12, %v2679_v35, %v2673_v32 }
 0x513   : > { %2786 = vrot.lane.b32.xlu0 %v2785_v41, %s2875_s16 }
 0x514   : > { %2811 = vrot.lane.b32.xlu1 %v2810_v48, %s2875_s16 }
 0x517   : > { %2796 = vrot.lane.b32.xlu0 %v2795_v0, %s2875_s16 }
 0x518   : > { %2821 = vrot.lane.b32.xlu1 %v2820_v62, %s2875_s16 }
 0x51b   : > { %2816 = vrot.lane.b32.xlu0 %v2815_v22, %s2875_s16 }
 0x51c   : > { %2836 = vrot.lane.b32.xlu1 %v2835_v10, %s2875_s16  ;;  %v2703_v10 = vunpack.i.l.bf16 %v3615_v37 }
 0x51f   : > { %2826 = vrot.lane.b32.xlu0 %v2825_v9, %s2875_s16  ;;  %v1778_v9 = vsel %vm663_vm12, %v2693_v56, %v2694_v23 }
 0x520   : > { %2846 = vrot.lane.b32.xlu1 %v2845_v15, %s2875_s16 }
 0x523   : > { %2831 = vrot.lane.b32.xlu0 %v2830_v17, %s2875_s16  ;;  %v1777_v17 = vsel %vm663_vm12, %v2703_v10, %v2693_v56 }
 0x527   : > { %2841 = vrot.lane.b32.xlu0 %v2840_v3, %s2875_s16 }
 0x52b   : > { %2851 = vrot.lane.b32.xlu0 %v2850_v7, %s2875_s16 }
 0x559   : > { %v2682_v59 = vpop.permute.xlu0 %2681 }
 0x55a   : > { %v2684_v54 = vunpack.i.h.bf16 %v2682_v59  ;;  %v2683_v49 = vunpack.i.l.bf16 %v2682_v59  ;;  %v1784_v59 = vsel %vm663_vm12, %v2708_v1, %v2709_v44 }
 0x55c   : > { %v1774_v48 = vsel %vm663_vm12, %v2683_v49, %v2684_v54 }
 0x55d   : > { %v3619_v27 = vpop.permute.xlu1 %2711  ;;  %v2697_v28 = vpop.permute.xlu0 %2696 }
 0x55e   : > { %v2699_v26 = vunpack.i.h.bf16 %v2697_v28  ;;  %v2698_v62 = vunpack.i.l.bf16 %v2697_v28  ;;  %v2714_v28 = vunpack.i.h.bf16 %v3619_v27  ;;  %v2713_v12 = vunpack.i.l.bf16 %v3619_v27 }
 0x560   : > { %v1780_v22 = vsel %vm663_vm12, %v2698_v62, %v2699_v26  ;;  %v1779_v42 = vsel %vm663_vm12, %v2704_v8, %v2698_v62 }
 0x561   : > { %v3624_v61 = vpop.permute.xlu1 %2721  ;;  %v3626_v25 = vpop.permute.xlu0 %2716  ;;  %v2104_v15 = vpack.c.bf16 %v1780_v22, %v1778_v9  ;;  %v2106_v7 = vpack.c.bf16 %v1779_v42, %v1777_v17 }
 0x562   : > { %v2719_v57 = vunpack.i.h.bf16 %v3626_v25  ;;  %v2718_v45 = vunpack.i.l.bf16 %v3626_v25  ;;  %v2724_v31 = vunpack.i.h.bf16 %v3624_v61  ;;  %v2723_v32 = vunpack.i.l.bf16 %v3624_v61 }
 0x565   : > { %v2737_v33 = vpop.permute.xlu1 %2736  ;;  %v1592_v47 = vpop.permute.xlu0 %1591 }
 0x566   : > { %v2739_v34 = vunpack.i.h.bf16 %v2737_v33  ;;  %v2738_v50 = vunpack.i.l.bf16 %v2737_v33  ;;  %v1599_v51 = vsel %vm605_vm11, %v3499_v11, %v1592_v47  ;;  %v1600_v52 = vsel %vm605_vm11, %v1592_v47, %v3512_v24 }
 0x567   : > { %1761 = vrot.lane.b32.xlu1 %v1599_v51, %s2875_s16  ;;  %1763 = vrot.lane.b32.xlu0 %v1600_v52, %s2875_s16  ;;  %v1790_v51 = vsel %vm663_vm12, %v2718_v45, %v2719_v57 }
 0x568   : > { %v1770_v5 = vsel %vm663_vm12, %v2738_v50, %v2739_v34  ;;  %v1769_v58 = vsel %vm663_vm12, %v2678_v38, %v2738_v50 }
 0x569   : > { %v2747_v60 = vpop.permute.xlu1 %2746  ;;  %v3640_v63 = vpop.permute.xlu0 %2726  ;;  %v2096_v41 = vpack.c.bf16 %v1772_v53, %v1770_v5  ;;  %v2098_v40 = vpack.c.bf16 %v1771_v36, %v1769_v58  ;;  %v1792_v58 = vsel %vm663_vm12, %v2723_v32, %v2724_v31 }
 0x56a   : > { %v2749_v24 = vunpack.i.h.bf16 %v2747_v60  ;;  %v2748_v39 = vunpack.i.l.bf16 %v2747_v60  ;;  %v2728_v52 = vunpack.i.l.bf16 %v3640_v63  ;;  %v2729_v54 = vunpack.i.h.bf16 %v3640_v63 }
 0x56b   : > { %2097 = vmatprep.subr.bf16.mxu0 %v2096_v41  ;;  %1759 = vrot.lane.b32.xlu1 %v3499_v11, %s2875_s16  ;;  %v1786_v60 = vsel %vm663_vm12, %v2713_v12, %v2714_v28  ;;  %v2116_v62 = vpack.c.bf16 %v1792_v58, %v1790_v51 }
 0x56c   : > { %2099 = vmatpush1.bf16.msra.mxu0 %v2098_v40  ;;  %v1776_v4 = vsel %vm663_vm12, %v2748_v39, %v2749_v24  ;;  %v1789_v23 = vsel %vm663_vm12, %v2728_v52, %v2718_v45 }
 0x56d   : > { %v3646_v43 = vpop.permute.xlu1 %2751  ;;  %v3648_v0 = vpop.permute.xlu0 %2731  ;;  %v2100_v21 = vpack.c.bf16 %v1776_v4, %v1774_v48 }
 0x56e   : > { %v2734_v63 = vunpack.i.h.bf16 %v3648_v0  ;;  %v2754_v56 = vunpack.i.h.bf16 %v3646_v43 }
 0x56f   : > { %2101 = vmatprep.subr.bf16.mxu0 %v2100_v21  ;;  %v2733_v21 = vunpack.i.l.bf16 %v3648_v0 }
 0x571   : > { %v2742_v2 = vpop.permute.xlu0 %2741 }
 0x572   : > { %v2744_v6 = vunpack.i.h.bf16 %v2742_v2  ;;  %v2743_v11 = vunpack.i.l.bf16 %v2742_v2  ;;  %v2762_v55 = vpop.permute.xlu1 %2761  ;;  %v2753_v2 = vunpack.i.l.bf16 %v3646_v43 }
 0x573   : > { %v2763_v35 = vunpack.i.l.bf16 %v2762_v55  ;;  %v2764_v27 = vunpack.i.h.bf16 %v2762_v55 }
 0x574   : > { %v1773_v30 = vsel %vm663_vm12, %v2743_v11, %v2683_v49  ;;  %v1775_v20 = vsel %vm663_vm12, %v2744_v6, %v2748_v39  ;;  %v1791_v6 = vsel %vm663_vm12, %v2729_v54, %v2723_v32 }
 0x575   : > { %v2757_v29 = vpop.permute.xlu0 %2756  ;;  %v2102_v13 = vpack.c.bf16 %v1775_v20, %v1773_v30  ;;  %v1785_v40 = vsel %vm663_vm12, %v2763_v35, %v2713_v12  ;;  %v2118_v20 = vpack.c.bf16 %v1791_v6, %v1789_v23 }
 0x576   : > { %v3660_v14 = vpop.permute.xlu1 %2766  ;;  %v2759_v16 = vunpack.i.h.bf16 %v2757_v29  ;;  %v2758_v18 = vunpack.i.l.bf16 %v2757_v29  ;;  %v1796_v29 = vsel %vm663_vm12, %v2733_v21, %v2734_v63 }
 0x577   : > { %2103 = vmatpush1.bf16.msra.mxu0 %v2102_v13  ;;  %v2769_v49 = vunpack.i.h.bf16 %v3660_v14  ;;  %v2768_v5 = vunpack.i.l.bf16 %v3660_v14 }
 0x578   : > { %2105 = vmatprep.subr.bf16.mxu0 %v2104_v15  ;;  %v1783_v33 = vsel %vm663_vm12, %v2759_v16, %v2708_v1  ;;  %v1795_v1 = vsel %vm663_vm12, %v2754_v56, %v2733_v21 }
 0x579   : > { %v2772_v3 = vpop.permute.xlu0 %2771  ;;  %v1794_v11 = vsel %vm663_vm12, %v2768_v5, %v2769_v49  ;;  %v1793_v13 = vsel %vm663_vm12, %v2753_v2, %v2768_v5 }
 0x57a   : > { %v2774_v37 = vunpack.i.h.bf16 %v2772_v3  ;;  %v2773_v46 = vunpack.i.l.bf16 %v2772_v3  ;;  %v3666_v19 = vpop.permute.xlu1 %2791  ;;  %v2120_v44 = vpack.c.bf16 %v1796_v29, %v1794_v11  ;;  %v2122_v16 = vpack.c.bf16 %v1795_v1, %v1793_v13 }
 0x57b   : > { %2107 = vmatpush1.bf16.msra.mxu0 %v2106_v7  ;;  %v2794_v17 = vunpack.i.h.bf16 %v3666_v19  ;;  %v2793_v57 = vunpack.i.l.bf16 %v3666_v19 }
 0x57c   : > { %v1782_v25 = vsel %vm663_vm12, %v2773_v46, %v2774_v37  ;;  %v1781_v38 = vsel %vm663_vm12, %v2758_v18, %v2773_v46 }
 0x57d   : > { %v2777_v47 = vpop.permute.xlu0 %2776  ;;  %v2108_v34 = vpack.c.bf16 %v1784_v59, %v1782_v25  ;;  %v2110_v50 = vpack.c.bf16 %v1783_v33, %v1781_v38  ;;  %v1802_v19 = vsel %vm663_vm12, %v2793_v57, %v2794_v17  ;;  %v1601_v17 = vld [vmem:[%s3741_s9] sm:$0xff] }
 0x57e   : > { %v3678_v53 = vpop.permute.xlu1 %2801  ;;  %v2779_v36 = vunpack.i.h.bf16 %v2777_v47  ;;  %v2778_v61 = vunpack.i.l.bf16 %v2777_v47 }
 0x57f   : > { %2109 = vmatprep.subr.bf16.mxu0 %v2108_v34  ;;  %v2804_v28 = vunpack.i.h.bf16 %v3678_v53  ;;  %v2803_v12 = vunpack.i.l.bf16 %v3678_v53 }
 0x580   : > { %2111 = vmatpush1.bf16.msra.mxu0 %v2110_v50  ;;  %v1788_v41 = vsel %vm663_vm12, %v2778_v61, %v2779_v36  ;;  %v1787_v24 = vsel %vm663_vm12, %v2764_v27, %v2778_v61 }
 0x581   : > { %v2782_v39 = vpop.permute.xlu0 %2781  ;;  %v2112_v48 = vpack.c.bf16 %v1788_v41, %v1786_v60  ;;  %v2114_v4 = vpack.c.bf16 %v1787_v24, %v1785_v40  ;;  %v1801_v51 = vsel %vm663_vm12, %v2803_v12, %v2793_v57 }
 0x582   : > { %v2807_v26 = vpop.permute.xlu1 %2806  ;;  %v2784_v8 = vunpack.i.h.bf16 %v2782_v39  ;;  %v2783_v10 = vunpack.i.l.bf16 %v2782_v39 }
 0x583   : > { %2113 = vmatprep.subr.bf16.mxu0 %v2112_v48  ;;  %v2809_v55 = vunpack.i.h.bf16 %v2807_v26  ;;  %v2808_v22 = vunpack.i.l.bf16 %v2807_v26 }
 0x584   : > { %2115 = vmatpush1.bf16.msra.mxu0 %v2114_v4  ;;  %v1798_v14 = vsel %vm663_vm12, %v2783_v10, %v2784_v8 }
 0x585   : > { %v2787_v30 = vpop.permute.xlu0 %2786  ;;  %2117 = vmatprep.subr.bf16.mxu0 %v2116_v62  ;;  %v1800_v15 = vsel %vm663_vm12, %v2808_v22, %v2809_v55 }
 0x586   : > { %v2812_v0 = vpop.permute.xlu1 %2811  ;;  %v2789_v9 = vunpack.i.h.bf16 %v2787_v30  ;;  %v2788_v43 = vunpack.i.l.bf16 %v2787_v30  ;;  %v2124_v18 = vpack.c.bf16 %v1800_v15, %v1798_v14 }
 0x587   : > { %v2814_v33 = vunpack.i.h.bf16 %v2812_v0  ;;  %v2813_v47 = vunpack.i.l.bf16 %v2812_v0 }
 0x588   : > { %2119 = vmatpush1.bf16.msra.mxu0 %v2118_v20  ;;  %v1797_v37 = vsel %vm663_vm12, %v2788_v43, %v2783_v10  ;;  %v1799_v46 = vsel %vm663_vm12, %v2789_v9, %v2808_v22 }
 0x589   : > { %v2797_v42 = vpop.permute.xlu0 %2796  ;;  %2121 = vmatprep.subr.bf16.mxu0 %v2120_v44  ;;  %v2126_v32 = vpack.c.bf16 %v1799_v46, %v1797_v37  ;;  %v1808_v58 = vsel %vm663_vm12, %v2813_v47, %v2814_v33 }
 0x58a   : > { %v2822_v45 = vpop.permute.xlu1 %2821  ;;  %v2799_v3 = vunpack.i.h.bf16 %v2797_v42  ;;  %v2798_v7 = vunpack.i.l.bf16 %v2797_v42 }
 0x58b   : > { %v2824_v61 = vunpack.i.h.bf16 %v2822_v45  ;;  %v2823_v54 = vunpack.i.l.bf16 %v2822_v45 }
 0x58c   : > { %2123 = vmatpush1.bf16.msra.mxu0 %v2122_v16  ;;  %v1804_v59 = vsel %vm663_vm12, %v2798_v7, %v2799_v3  ;;  %v1803_v38 = vsel %vm663_vm12, %v2804_v28, %v2798_v7 }
 0x58d   : > { %v2817_v31 = vpop.permute.xlu0 %2816  ;;  %2125 = vmatprep.subr.bf16.mxu0 %v2124_v18  ;;  %v2128_v25 = vpack.c.bf16 %v1804_v59, %v1802_v19  ;;  %v2130_v36 = vpack.c.bf16 %v1803_v38, %v1801_v51  ;;  %v1810_v26 = vsel %vm663_vm12, %v2823_v54, %v2824_v61 }
 0x58e   : > { %v2837_v35 = vpop.permute.xlu1 %2836  ;;  %v2819_v34 = vunpack.i.h.bf16 %v2817_v31  ;;  %v2818_v52 = vunpack.i.l.bf16 %v2817_v31 }
 0x58f   : > { %v2838_v49 = vunpack.i.l.bf16 %v2837_v35  ;;  %v2839_v4 = vunpack.i.h.bf16 %v2837_v35 }
 0x590   : > { %2127 = vmatpush1.bf16.msra.mxu0 %v2126_v32  ;;  %v1807_v41 = vsel %vm663_vm12, %v2819_v34, %v2813_v47 }
 0x591   : > { %v2827_v50 = vpop.permute.xlu0 %2826  ;;  %2129 = vmatprep.subr.bf16.mxu0 %v2128_v25  ;;  %v1809_v62 = vsel %vm663_vm12, %v2838_v49, %v2823_v54 }
 0x592   : > { %v2829_v27 = vunpack.i.h.bf16 %v2827_v50  ;;  %v2828_v53 = vunpack.i.l.bf16 %v2827_v50  ;;  %v2847_v40 = vpop.permute.xlu1 %2846 }
 0x593   : > { %v2849_v23 = vunpack.i.h.bf16 %v2847_v40  ;;  %v2848_v56 = vunpack.i.l.bf16 %v2847_v40 }
 0x594   : > { %2131 = vmatpush1.bf16.msra.mxu0 %v2130_v36  ;;  %v1806_v5 = vsel %vm663_vm12, %v2828_v53, %v2829_v27  ;;  %v1805_v60 = vsel %vm663_vm12, %v2818_v52, %v2828_v53 }
 0x595   : > { %v2832_v24 = vpop.permute.xlu0 %2831  ;;  %v2132_v39 = vpack.c.bf16 %v1808_v58, %v1806_v5  ;;  %v2134_v48 = vpack.c.bf16 %v1807_v41, %v1805_v60  ;;  %v1816_v0 = vsel %vm663_vm12, %v2848_v56, %v2849_v23 }
 0x596   : > { %v2834_v63 = vunpack.i.h.bf16 %v2832_v24  ;;  %v2833_v21 = vunpack.i.l.bf16 %v2832_v24 }
 0x597   : > { %2133 = vmatprep.subr.bf16.mxu0 %v2132_v39 }
 0x598   : > { %2135 = vmatpush1.bf16.msra.mxu0 %v2134_v48  ;;  %v1812_v2 = vsel %vm663_vm12, %v2833_v21, %v2834_v63  ;;  %v1811_v6 = vsel %vm663_vm12, %v2839_v4, %v2833_v21 }
 0x599   : > { %v2842_v11 = vpop.permute.xlu0 %2841  ;;  %v2136_v55 = vpack.c.bf16 %v1812_v2, %v1810_v26  ;;  %v2138_v22 = vpack.c.bf16 %v1811_v6, %v1809_v62 }
 0x59a   : > { %v2844_v8 = vunpack.i.h.bf16 %v2842_v11  ;;  %v2843_v10 = vunpack.i.l.bf16 %v2842_v11 }
 0x59b   : > { %2137 = vmatprep.subr.bf16.mxu0 %v2136_v55 }
 0x59c   : > { %2139 = vmatpush1.bf16.msra.mxu0 %v2138_v22  ;;  %v1814_v30 = vsel %vm663_vm12, %v2843_v10, %v2844_v8 }
 0x59d   : > { %v2852_v20 = vpop.permute.xlu0 %2851  ;;  %v2140_v29 = vpack.c.bf16 %v1816_v0, %v1814_v30 }
 0x59e   : > { %v2854_v13 = vunpack.i.h.bf16 %v2852_v20  ;;  %v2853_v9 = vunpack.i.l.bf16 %v2852_v20 }
 0x59f   : > { %2141 = vmatprep.subr.bf16.mxu0 %v2140_v29 }
 0x5a0   : > { %v1813_v43 = vsel %vm663_vm12, %v2853_v9, %v2843_v10  ;;  %v1815_v44 = vsel %vm663_vm12, %v2854_v13, %v2848_v56 }
 0x5a1   : > { %v2142_v1 = vpack.c.bf16 %v1815_v44, %v1813_v43 }
 0x5a3   : > { %2143 = vmatpush1.bf16.msra.mxu0 %v2142_v1 }
 0x5d9   : > { %v1762_v14 = vpop.permute.xlu1 %1761  ;;  %v1764_v15 = vpop.permute.xlu0 %1763 }
 0x5da   : > { %v1818_v42 = vsel %vm663_vm12, %v1762_v14, %v1764_v15 }
 0x5db   : > { %1929 = vmatprep.subr.mxu0 %v1818_v42 }
 0x5dd   : > { %v1760_v16 = vpop.permute.xlu1 %1759 }
 0x5de   : > { %v1817_v57 = vsel %vm663_vm12, %v1760_v16, %v1762_v14 }
 0x5df   : > { %1930 = vmatpush1.msra.mxu0 %v1817_v57 }
 0x5e0   : > { %1942 = vmatmul.mubr.f32.vlgmr.msra.gmra.mrb[0].mxu0 %v1601_v17 }
 0x6b3   : > { %v1943_v45 = vpop.f32.mrb[0].mxu0 }
 0x6b4   : > { %1964 = vst [vmem:[%s2954_s27 + $0x30] sm:$0xff] %v1943_v45  ;;  %v1945_v3 = vpop.f32.mrb[1].mxu0 }
 0x6b5   : > { %1965 = vst [vmem:[%s2954_s27 + $0x38] sm:$0xff] %v1945_v3 }
 0x6b6 PF: > { %s20_s13 = sadd.s32 1, %s2863_s13  }
 0x6b7   : > { %p17_p4 = scmp.ge.s32.totalorder %s20_s13, 4  }
 0x6b9   :  { %19 = sbr.rel (!%p17_p4) target bundleno = 1 (0x1), region = 90 }

</bundles_post_ra>
